<compile_context>
chip_gen: v6e
topology: v6e:2x2x1
jax: 0.10.0
libtpu: 0.0.40
codegen_flags: <defaults>
</compile_context>

<pallas_src>
import functools

import jax
import jax.numpy as jnp
import numpy as np
from jax.experimental import pallas as pl
from jax.experimental.pallas import tpu as pltpu


# ----------------------------- fused Pallas kernel -----------------------------

def _middle_block_kernel(x_ref, temb_ref, gcat_ref, sel_ref, selT_ref, mask_ref,
                         w1_ref, w2_ref, ln_ref, th_ref, rm_ref, o_ref,
                         *, V, T, C, G, n_res, ks):
    """One grid step = one batch group (G batches packed along sublanes).

    Activation layout: (G*C, V*T)  -- lane-dense, one f32 vreg for G*C == 8."""
    P = V * T
    GC = G * C
    f32 = jnp.float32

    h = x_ref[0].astype(f32)            # (GC, P)
    temb_all = temb_ref[0]              # (n_res*GC, 1)
    gcat = gcat_ref[...]                # (P, ks*P)   lane-concat kron operators
    sel = sel_ref[...]                  # (P, T)      one-hot of (p mod T)
    selT = selT_ref[...]                # (T, P)
    masks = mask_ref[...]               # (9, P)      per-tap validity masks
    rm = rm_ref[...]                    # (2GC, 2GC)  per-batch moment reducer
    ones_blk = jnp.ones((GC, P), f32)   # carries the biases through the MXU

    def conv_block(a, w_flat):
        """Conv2d(kernel=(3,3), pad=(1,2)) + chomp(2) + bias + identity shortcut
        as ONE matmul: stack the 9 masked roll-shifts (+ ones block) along
        sublanes and multiply by the pre-packed (GC, 10*GC) weight."""
        pieces = []
        for av in range(3):             # node offset dv = av - 1
            for ct in range(3):         # causal time offset dt = ct - 2
                j = av * 3 + ct
                s = (av - 1) * T + (ct - 2)            # flat lane shift
                if s == 0:
                    pieces.append(a)                   # centre tap: mask == 1
                else:
                    pieces.append(pltpu.roll(a, (-s) % P, axis=1) * masks[j:j + 1])
        pieces.append(ones_blk)
        stack = jnp.concatenate(pieces, axis=0)        # (10*GC, P)
        return jnp.dot(w_flat, stack, preferred_element_type=f32)

    def layer_norm(a, gamma, beta):
        """nn.LayerNorm([V, C]): joint stats over (V, C) per batch & time step."""
        st = jnp.concatenate([a, a * a], axis=0)                        # (2GC, P)
        red = jnp.dot(st, sel, preferred_element_type=f32)              # (2GC, T)
        mom = jnp.dot(rm, red, preferred_element_type=f32)              # (2GC, T)
        mean_r = mom[:GC]                                               # E[x]  per row
        ex2_r = mom[GC:]                                                # E[x^2] per row
        istd_r = jax.lax.rsqrt(ex2_r - mean_r * mean_r + 1e-5)
        stats = jnp.concatenate([mean_r, istd_r], axis=0)               # (2GC, T)
        lanes = jnp.dot(stats, selT, preferred_element_type=f32)        # (2GC, P)
        return (a - lanes[:GC]) * lanes[GC:] * gamma + beta

    for r in range(n_res):              # the two ResidualBlocks, fully unrolled
        x_in = h
        ln_r = ln_ref[r]                # (2GC, P)
        temb_r = temb_all[r * GC:(r + 1) * GC]          # (GC, 1) lane-broadcast

        # tcn1 (conv + bias + identity shortcut fused in the weight) + t-embedding
        h1 = conv_block(x_in, w1_ref[r]) + temb_r
        # tcn2 (conv + bias + identity shortcut fused in the weight)
        h2 = conv_block(h1, w2_ref[r])
        # LayerNorm([V, C])
        hn = layer_norm(h2, ln_r[:GC], ln_r[GC:])
        # spatial graph conv: sum_k theta_k^T @ (hn @ kron(A_k^T, I_T)) + bsp
        hg_all = jnp.dot(hn, gcat, preferred_element_type=f32)          # (GC, ks*P)
        gpieces = [hg_all[:, k * P:(k + 1) * P] for k in range(ks)] + [ones_blk]
        gstack = jnp.concatenate(gpieces, axis=0)                       # ((ks+1)*GC, P)
        x_gc = jnp.dot(th_ref[r], gstack, preferred_element_type=f32)   # (GC, P)
        # relu(x_gc + hn) + residual shortcut(x)
        h = jnp.maximum(x_gc + hn, 0.0) + x_in

    o_ref[0] = h


# ----------------------------- one-time constant preparation -----------------------------

def prepare_middle_block(params, supports, *, batch_size, V, T, batch_group=None):
    """Build all kernel constants ONCE (kron graph operators, LN selectors, tap
    masks, block-diagonal repacked weights).  Returns a dict consumed by
    middle_block_apply.  `batch_group=1` keeps a per-batch grid (v7x megacore);
    the default packs as many batches as fit into 8 sublanes (v5e/v6e)."""
    C = int(params["res1"]["w1"].shape[0])
    d_h = int(params["res1"]["wt"].shape[0])
    ks = int(supports.shape[0])
    n_res = 2
    P = V * T
    assert P % 128 == 0, "V*T must be a multiple of 128 (full 128-lane vregs)"

    if batch_group is None:
        batch_group = 1
        for cand in range(1, batch_size + 1):
            if batch_size % cand == 0 and cand * C <= 8:
                batch_group = cand
    G = batch_group
    assert batch_size % G == 0
    GC = G * C
    NG = batch_size // G
    f32 = np.float32

    # graph operator in flat lane space, lane-concatenated over ks:
    # (h @ G_k)[i, n*T + t] = sum_m A_k[n, m] * h[i, m*T + t]
    sup = np.asarray(supports, f32)
    eye_t = np.eye(T, dtype=f32)
    gcat = np.concatenate([np.kron(sup[k].T, eye_t) for k in range(ks)], axis=1)  # (P, ks*P)

    # LayerNorm per-time-step selectors
    p_idx = np.arange(P)
    pmod = p_idx % T
    sel = (pmod[:, None] == np.arange(T)[None, :]).astype(f32)      # (P, T)
    selT = np.ascontiguousarray(sel.T)                              # (T, P)

    # per-batch moment-reduction matrix for [a ; a*a] stacks
    inv_n = 1.0 / float(V * C)
    rm = np.zeros((2 * GC, 2 * GC), f32)
    for half in range(2):
        for r0 in range(GC):
            for r1 in range(GC):
                if r0 // C == r1 // C:
                    rm[half * GC + r0, half * GC + r1] = inv_n

    # conv tap validity masks (node boundary + causal time boundary), order (a, c)
    mrows = []
    for av in range(3):
        for ct in range(3):
            s = (av - 1) * T + (ct - 2)
            dt = ct - 2
            mrows.append(((p_idx + s >= 0) & (p_idx + s < P) & (pmod + dt >= 0)).astype(f32))
    tap_mask = np.stack(mrows)                                      # (9, P)

    def conv_flat(w, bias, fold_identity):
        """(C,C,3,3) torch conv weight -> (GC, 10*GC) block-diag tap-stacked weight
        with bias in the trailing ones-block column and the identity TCN shortcut
        folded into the centre tap."""
        w = np.asarray(w, f32)
        bias = np.asarray(bias, f32).reshape(C)
        wf = np.zeros((GC, 10 * GC), f32)
        for b in range(G):
            for j in range(9):
                a_, c_ = j // 3, j % 3
                blk = w[:, :, a_, c_].copy()
                if fold_identity and j == 5:                        # dv = 0, dt = 0
                    blk += np.eye(C, dtype=f32)
                wf[b * C:(b + 1) * C, j * GC + b * C: j * GC + (b + 1) * C] = blk
            wf[b * C:(b + 1) * C, 9 * GC] = bias                    # ones-block column
        return wf

    def theta_flat(theta, bsp):
        """theta (C_in, C_out, ks) -> (GC, (ks+1)*GC) block-diag with spatial bias
        in the trailing ones-block column."""
        theta = np.asarray(theta, f32)
        bsp = np.asarray(bsp, f32).reshape(C)
        tf = np.zeros((GC, (ks + 1) * GC), f32)
        for b in range(G):
            for k in range(ks):
                tf[b * C:(b + 1) * C, k * GC + b * C: k * GC + (b + 1) * C] = theta[:, :, k].T
            tf[b * C:(b + 1) * C, ks * GC] = bsp
        return tf

    def ln_flat(gamma, beta):
        gamma = np.asarray(gamma, f32)
        beta = np.asarray(beta, f32)
        g = np.broadcast_to(gamma.T[:, :, None], (C, V, T)).reshape(C, P)
        b_ = np.broadcast_to(beta.T[:, :, None], (C, V, T)).reshape(C, P)
        return np.concatenate([np.tile(g, (G, 1)), np.tile(b_, (G, 1))], axis=0)   # (2GC, P)

    res = [params["res1"], params["res2"]]
    const = dict(
        gcat=jnp.asarray(gcat),
        sel=jnp.asarray(sel),
        selT=jnp.asarray(selT),
        masks=jnp.asarray(tap_mask),
        RM=jnp.asarray(rm),
        W1=jnp.asarray(np.stack([conv_flat(p["w1"], p["b1"], True) for p in res])),
        W2=jnp.asarray(np.stack([conv_flat(p["w2"], p["b2"], True) for p in res])),
        TH=jnp.asarray(np.stack([theta_flat(p["theta"], p["bsp"]) for p in res])),
        LN=jnp.asarray(np.stack([ln_flat(p["gamma"], p["beta"]) for p in res])),
        WT=jnp.asarray(np.stack([np.asarray(p["wt"], f32) for p in res])),          # (n_res, d_h, C)
        BT=jnp.asarray(np.stack([np.asarray(p["bt"], f32).reshape(1, C) for p in res])),
    )
    meta = dict(B=batch_size, C=C, V=V, T=T, d_h=d_h, ks=ks, n_res=n_res, G=G, NG=NG)
    return dict(const=const, meta=meta)


# ----------------------------- per-call forward (wrap in jit via partial) -----------------------------

def middle_block_apply(prepared, x, t):
    c = prepared["const"]
    m = prepared["meta"]
    B, C, V, T = m["B"], m["C"], m["V"], m["T"]
    G, NG, n_res, ks = m["G"], m["NG"], m["n_res"], m["ks"]
    P = V * T
    GC = G * C
    f32 = jnp.float32

    # batch packed into sublanes: (NG, G*C, V*T)
    x_packed = x.astype(f32).reshape(NG, GC, P)

    # t-embedding (tiny GEMM) precomputed outside the kernel, packed per group
    temb = jnp.einsum('bd,rdc->rbc', t.astype(f32), c["WT"]) + c["BT"]       # (n_res, B, C)
    temb = jnp.transpose(temb.reshape(n_res, NG, GC), (1, 0, 2)).reshape(NG, n_res * GC, 1)

    kernel = functools.partial(_middle_block_kernel,
                               V=V, T=T, C=C, G=G, n_res=n_res, ks=ks)
    c2 = lambda g: (0, 0)
    c3 = lambda g: (0, 0, 0)

    out = pl.pallas_call(
        kernel,
        out_shape=jax.ShapeDtypeStruct((NG, GC, P), f32),
        grid=(NG,),
        in_specs=[
            pl.BlockSpec((1, GC, P), lambda g: (g, 0, 0)),                   # x (per group)
            pl.BlockSpec((1, n_res * GC, 1), lambda g: (g, 0, 0)),           # temb (per group)
            pl.BlockSpec((P, ks * P), c2),                                   # kron graph operators
            pl.BlockSpec((P, T), c2),                                        # sel
            pl.BlockSpec((T, P), c2),                                        # selT
            pl.BlockSpec((9, P), c2),                                        # conv tap masks
            pl.BlockSpec((n_res, GC, 10 * GC), c3),                          # conv1 packed weights
            pl.BlockSpec((n_res, GC, 10 * GC), c3),                          # conv2 packed weights
            pl.BlockSpec((n_res, 2 * GC, P), c3),                            # LN gamma/beta (flat)
            pl.BlockSpec((n_res, GC, (ks + 1) * GC), c3),                    # theta packed (+bsp)
            pl.BlockSpec((2 * GC, 2 * GC), c2),                              # LN moment reducer
        ],
        out_specs=pl.BlockSpec((1, GC, P), lambda g: (g, 0, 0)),
        compiler_params=pltpu.CompilerParams(dimension_semantics=("parallel",)),
    )(x_packed, temb, c["gcat"], c["sel"], c["selT"], c["masks"],
      c["W1"], c["W2"], c["LN"], c["TH"], c["RM"])

    return out.reshape(B, C, V, T)


# ----------------------------- pure-JAX reference (for validation) -----------------------------

_HI = jax.lax.Precision.HIGHEST


def _conv_ref(x, w, b):
    B, Ci, V, T = x.shape
    Co = w.shape[0]
    xp = jnp.pad(x, ((0, 0), (0, 0), (1, 1), (2, 0)))
    out = jnp.zeros((B, Co, V, T), jnp.float32)
    for a in range(3):
        for c in range(3):
            out = out + jnp.einsum('oi,bivt->bovt', w[:, :, a, c],
                                   xp[:, :, a:a + V, c:c + T], precision=_HI)
    return out + b[None, :, None, None]


def _residual_ref(x, t, A, p):
    B, C, V, T = x.shape
    h = _conv_ref(x, p["w1"], p["b1"]) + x
    temb = jnp.matmul(t, p["wt"], precision=_HI) + p["bt"]
    h = h + temb[:, :, None, None]
    h = _conv_ref(h, p["w2"], p["b2"]) + h
    ht = jnp.transpose(h, (0, 3, 2, 1))
    mu = ht.mean(axis=(2, 3), keepdims=True)
    var = ((ht - mu) ** 2).mean(axis=(2, 3), keepdims=True)
    hn = (ht - mu) / jnp.sqrt(var + 1e-5) * p["gamma"] + p["beta"]
    h = jnp.transpose(hn, (0, 3, 2, 1))
    hs = jnp.transpose(h, (0, 1, 3, 2))                     # (B, C, T, V)
    x_c = jnp.einsum('knm,bitm->bitkn', A, hs, precision=_HI)
    x_gc = (jnp.einsum('iok,bitkn->botn', p["theta"], x_c, precision=_HI)
            + p["bsp"].reshape(1, C, 1, 1))
    sp = jax.nn.relu(x_gc + hs)
    h = jnp.transpose(sp, (0, 1, 3, 2))
    return h + x


def _middle_ref(x, t, A, params):
    x = _residual_ref(x, t, A, params["res1"])
    x = _residual_ref(x, t, A, params["res2"])
    return x


# ----------------------------- deterministic param init -----------------------------

def init_res_params(key, C, d_h, V, ks):
    ks_ = jax.random.split(key, 8)
    s = 0.3
    return dict(
        w1=jax.random.normal(ks_[0], (C, C, 3, 3), jnp.float32) * s,
        b1=jax.random.normal(ks_[1], (C,), jnp.float32) * s,
        w2=jax.random.normal(ks_[2], (C, C, 3, 3), jnp.float32) * s,
        b2=jax.random.normal(ks_[3], (C,), jnp.float32) * s,
        wt=jax.random.normal(ks_[4], (d_h, C), jnp.float32) * s,   # t_conv weight (d_h -> C)
        bt=jax.random.normal(ks_[5], (1, C), jnp.float32) * s,
        theta=jax.random.normal(ks_[6], (C, C, ks), jnp.float32) * s,
        bsp=jax.random.normal(ks_[7], (1, C), jnp.float32) * s,
        gamma=jnp.ones((V, C), jnp.float32),                       # nn.LayerNorm default affine
        beta=jnp.zeros((V, C), jnp.float32),
    )


# ----------------------------- main -----------------------------

if __name__ == "__main__":
    B, C, V, T = 2, 4, 16, 8      # (batch, c_in, n_nodes, time); V*T = 128 lanes
    d_h, ks = 32, 2               # config.d_h, config.supports_len

    key = jax.random.PRNGKey(0)
    kx, kt, ka, kp1, kp2 = jax.random.split(key, 5)
    x = jax.random.normal(kx, (B, C, V, T), jnp.float32)
    t = jax.random.normal(kt, (B, d_h), jnp.float32)
    supports = jax.random.normal(ka, (ks, V, V), jnp.float32) * 0.2

    params = dict(
        res1=init_res_params(kp1, C, d_h, V, ks),
        res2=init_res_params(kp2, C, d_h, V, ks),
    )

    # constants (kron operators, selectors, repacked weights) built exactly once
    prepared = prepare_middle_block(params, supports, batch_size=B, V=V, T=T)
    apply_fn = jax.jit(functools.partial(middle_block_apply, prepared))

    out = jax.block_until_ready(apply_fn(x, t))

    ref = _middle_ref(x, t, supports, params)
    np.testing.assert_allclose(np.asarray(out), np.asarray(ref),
                               rtol=5e-4, atol=5e-4)
    print("KERNEL_OK")
</pallas_src>

<mosaic_0001>
module attributes {stable_mosaic.version = 11 : i64} {
  func.func @_middle_block_kernel(%arg0: i32, %arg1: memref<1x8x128xf32, #tpu.memory_space<vmem>>, %arg2: memref<1x16x1xf32, #tpu.memory_space<vmem>>, %arg3: memref<128x256xf32, #tpu.memory_space<vmem>>, %arg4: memref<128x8xf32, #tpu.memory_space<vmem>>, %arg5: memref<8x128xf32, #tpu.memory_space<vmem>>, %arg6: memref<9x128xf32, #tpu.memory_space<vmem>>, %arg7: memref<2x8x80xf32, #tpu.memory_space<vmem>>, %arg8: memref<2x8x80xf32, #tpu.memory_space<vmem>>, %arg9: memref<2x16x128xf32, #tpu.memory_space<vmem>>, %arg10: memref<2x8x24xf32, #tpu.memory_space<vmem>>, %arg11: memref<16x16xf32, #tpu.memory_space<vmem>>, %arg12: memref<1x8x128xf32, #tpu.memory_space<vmem>>) attributes {dimension_semantics = [#tpu.dimension_semantics<parallel>], iteration_bounds = array<i64: 1>, scalar_prefetch = 0 : i64, scratch_operands = 0 : i64, tpu.core_type = #tpu.core_type<tc>, window_params = [{transform_indices = @transform_0, window_bounds = array<i64: 1, 8, 128>}, {transform_indices = @transform_1, window_bounds = array<i64: 1, 16, 1>}, {pipeline_mode = #tpu.pipeline_mode<synchronous>, transform_indices = @transform_2, window_bounds = array<i64: 128, 256>}, {pipeline_mode = #tpu.pipeline_mode<synchronous>, transform_indices = @transform_3, window_bounds = array<i64: 128, 8>}, {pipeline_mode = #tpu.pipeline_mode<synchronous>, transform_indices = @transform_4, window_bounds = array<i64: 8, 128>}, {pipeline_mode = #tpu.pipeline_mode<synchronous>, transform_indices = @transform_5, window_bounds = array<i64: 9, 128>}, {pipeline_mode = #tpu.pipeline_mode<synchronous>, transform_indices = @transform_6, window_bounds = array<i64: 2, 8, 80>}, {pipeline_mode = #tpu.pipeline_mode<synchronous>, transform_indices = @transform_7, window_bounds = array<i64: 2, 8, 80>}, {pipeline_mode = #tpu.pipeline_mode<synchronous>, transform_indices = @transform_8, window_bounds = array<i64: 2, 16, 128>}, {pipeline_mode = #tpu.pipeline_mode<synchronous>, transform_indices = @transform_9, window_bounds = array<i64: 2, 8, 24>}, {pipeline_mode = #tpu.pipeline_mode<synchronous>, transform_indices = @transform_10, window_bounds = array<i64: 16, 16>}, {transform_indices = @transform_11, window_bounds = array<i64: 1, 8, 128>}]} {
    %c0 = arith.constant 0 : index
    %c0_0 = arith.constant 0 : index
    %c0_1 = arith.constant 0 : index
    %0 = vector.load %arg1[%c0, %c0_0, %c0_1] : memref<1x8x128xf32, #tpu.memory_space<vmem>>, vector<1x8x128xf32>
    %1 = vector.shape_cast %0 : vector<1x8x128xf32> to vector<8x128xf32>
    %c0_2 = arith.constant 0 : index
    %c0_3 = arith.constant 0 : index
    %c0_4 = arith.constant 0 : index
    %2 = vector.load %arg2[%c0_2, %c0_3, %c0_4] : memref<1x16x1xf32, #tpu.memory_space<vmem>>, vector<1x16x1xf32>
    %3 = vector.shape_cast %2 : vector<1x16x1xf32> to vector<16x1xf32>
    %c0_5 = arith.constant 0 : index
    %c0_6 = arith.constant 0 : index
    %4 = vector.load %arg3[%c0_5, %c0_6] : memref<128x256xf32, #tpu.memory_space<vmem>>, vector<128x256xf32>
    %c0_7 = arith.constant 0 : index
    %c0_8 = arith.constant 0 : index
    %5 = vector.load %arg4[%c0_7, %c0_8] : memref<128x8xf32, #tpu.memory_space<vmem>>, vector<128x8xf32>
    %c0_9 = arith.constant 0 : index
    %c0_10 = arith.constant 0 : index
    %6 = vector.load %arg5[%c0_9, %c0_10] : memref<8x128xf32, #tpu.memory_space<vmem>>, vector<8x128xf32>
    %c0_11 = arith.constant 0 : index
    %c0_12 = arith.constant 0 : index
    %7 = vector.load %arg6[%c0_11, %c0_12] : memref<9x128xf32, #tpu.memory_space<vmem>>, vector<9x128xf32>
    %c0_13 = arith.constant 0 : index
    %c0_14 = arith.constant 0 : index
    %8 = vector.load %arg11[%c0_13, %c0_14] : memref<16x16xf32, #tpu.memory_space<vmem>>, vector<16x16xf32>
    %cst = arith.constant 1.000000e+00 : f32
    %9 = vector.broadcast %cst : f32 to vector<8x128xf32>
    %c0_15 = arith.constant 0 : index
    %c0_16 = arith.constant 0 : index
    %c0_17 = arith.constant 0 : index
    %10 = vector.load %arg9[%c0_15, %c0_16, %c0_17] : memref<2x16x128xf32, #tpu.memory_space<vmem>>, vector<1x16x128xf32>
    %11 = vector.shape_cast %10 : vector<1x16x128xf32> to vector<16x128xf32>
    %12 = vector.extract_strided_slice %3 {offsets = [0, 0], sizes = [8, 1], strides = [1, 1]} : vector<16x1xf32> to vector<8x1xf32>
    %c0_18 = arith.constant 0 : index
    %c0_19 = arith.constant 0 : index
    %c0_20 = arith.constant 0 : index
    %13 = vector.load %arg7[%c0_18, %c0_19, %c0_20] : memref<2x8x80xf32, #tpu.memory_space<vmem>>, vector<1x8x80xf32>
    %14 = vector.shape_cast %13 : vector<1x8x80xf32> to vector<8x80xf32>
    %c10_i32 = arith.constant 10 : i32
    %15 = tpu.dynamic_rotate %1 by %c10_i32 dim 1 : vector<8x128xf32>, i32 -> vector<8x128xf32>
    %16 = vector.extract_strided_slice %7 {offsets = [0, 0], sizes = [1, 128], strides = [1, 1]} : vector<9x128xf32> to vector<1x128xf32>
    %17 = vector.broadcast %16 : vector<1x128xf32> to vector<8x128xf32>
    %18 = arith.mulf %15, %17 : vector<8x128xf32>
    %c9_i32 = arith.constant 9 : i32
    %19 = tpu.dynamic_rotate %1 by %c9_i32 dim 1 : vector<8x128xf32>, i32 -> vector<8x128xf32>
    %20 = vector.extract_strided_slice %7 {offsets = [1, 0], sizes = [1, 128], strides = [1, 1]} : vector<9x128xf32> to vector<1x128xf32>
    %21 = vector.broadcast %20 : vector<1x128xf32> to vector<8x128xf32>
    %22 = arith.mulf %19, %21 : vector<8x128xf32>
    %c8_i32 = arith.constant 8 : i32
    %23 = tpu.dynamic_rotate %1 by %c8_i32 dim 1 : vector<8x128xf32>, i32 -> vector<8x128xf32>
    %24 = vector.extract_strided_slice %7 {offsets = [2, 0], sizes = [1, 128], strides = [1, 1]} : vector<9x128xf32> to vector<1x128xf32>
    %25 = vector.broadcast %24 : vector<1x128xf32> to vector<8x128xf32>
    %26 = arith.mulf %23, %25 : vector<8x128xf32>
    %c2_i32 = arith.constant 2 : i32
    %27 = tpu.dynamic_rotate %1 by %c2_i32 dim 1 : vector<8x128xf32>, i32 -> vector<8x128xf32>
    %28 = vector.extract_strided_slice %7 {offsets = [3, 0], sizes = [1, 128], strides = [1, 1]} : vector<9x128xf32> to vector<1x128xf32>
    %29 = vector.broadcast %28 : vector<1x128xf32> to vector<8x128xf32>
    %30 = arith.mulf %27, %29 : vector<8x128xf32>
    %c1_i32 = arith.constant 1 : i32
    %31 = tpu.dynamic_rotate %1 by %c1_i32 dim 1 : vector<8x128xf32>, i32 -> vector<8x128xf32>
    %32 = vector.extract_strided_slice %7 {offsets = [4, 0], sizes = [1, 128], strides = [1, 1]} : vector<9x128xf32> to vector<1x128xf32>
    %33 = vector.broadcast %32 : vector<1x128xf32> to vector<8x128xf32>
    %34 = arith.mulf %31, %33 : vector<8x128xf32>
    %c122_i32 = arith.constant 122 : i32
    %35 = tpu.dynamic_rotate %1 by %c122_i32 dim 1 : vector<8x128xf32>, i32 -> vector<8x128xf32>
    %36 = vector.extract_strided_slice %7 {offsets = [6, 0], sizes = [1, 128], strides = [1, 1]} : vector<9x128xf32> to vector<1x128xf32>
    %37 = vector.broadcast %36 : vector<1x128xf32> to vector<8x128xf32>
    %38 = arith.mulf %35, %37 : vector<8x128xf32>
    %c121_i32 = arith.constant 121 : i32
    %39 = tpu.dynamic_rotate %1 by %c121_i32 dim 1 : vector<8x128xf32>, i32 -> vector<8x128xf32>
    %40 = vector.extract_strided_slice %7 {offsets = [7, 0], sizes = [1, 128], strides = [1, 1]} : vector<9x128xf32> to vector<1x128xf32>
    %41 = vector.broadcast %40 : vector<1x128xf32> to vector<8x128xf32>
    %42 = arith.mulf %39, %41 : vector<8x128xf32>
    %c120_i32 = arith.constant 120 : i32
    %43 = tpu.dynamic_rotate %1 by %c120_i32 dim 1 : vector<8x128xf32>, i32 -> vector<8x128xf32>
    %44 = vector.extract_strided_slice %7 {offsets = [8, 0], sizes = [1, 128], strides = [1, 1]} : vector<9x128xf32> to vector<1x128xf32>
    %45 = vector.broadcast %44 : vector<1x128xf32> to vector<8x128xf32>
    %46 = arith.mulf %43, %45 : vector<8x128xf32>
    %47 = tpu.concatenate %18, %22, %26, %30, %34, %1, %38, %42, %46, %9 in 0 : vector<8x128xf32>, vector<8x128xf32>, vector<8x128xf32>, vector<8x128xf32>, vector<8x128xf32>, vector<8x128xf32>, vector<8x128xf32>, vector<8x128xf32>, vector<8x128xf32>, vector<8x128xf32> -> vector<80x128xf32>
    %cst_21 = arith.constant dense<0.000000e+00> : vector<8x128xf32>
    %48 = tpu.matmul %14, %47, %cst_21 {dimension_numbers = #tpu.dot_dimension_numbers<[1], [0], [0], [1], [0, 0, 1, 1], [], []>} : vector<8x80xf32>, vector<80x128xf32>, vector<8x128xf32> -> vector<8x128xf32>
    %49 = vector.broadcast %12 : vector<8x1xf32> to vector<8x128xf32>
    %50 = arith.addf %48, %49 : vector<8x128xf32>
    %c0_22 = arith.constant 0 : index
    %c0_23 = arith.constant 0 : index
    %c0_24 = arith.constant 0 : index
    %51 = vector.load %arg8[%c0_22, %c0_23, %c0_24] : memref<2x8x80xf32, #tpu.memory_space<vmem>>, vector<1x8x80xf32>
    %52 = vector.shape_cast %51 : vector<1x8x80xf32> to vector<8x80xf32>
    %c10_i32_25 = arith.constant 10 : i32
    %53 = tpu.dynamic_rotate %50 by %c10_i32_25 dim 1 : vector<8x128xf32>, i32 -> vector<8x128xf32>
    %54 = vector.extract_strided_slice %7 {offsets = [0, 0], sizes = [1, 128], strides = [1, 1]} : vector<9x128xf32> to vector<1x128xf32>
    %55 = vector.broadcast %54 : vector<1x128xf32> to vector<8x128xf32>
    %56 = arith.mulf %53, %55 : vector<8x128xf32>
    %c9_i32_26 = arith.constant 9 : i32
    %57 = tpu.dynamic_rotate %50 by %c9_i32_26 dim 1 : vector<8x128xf32>, i32 -> vector<8x128xf32>
    %58 = vector.extract_strided_slice %7 {offsets = [1, 0], sizes = [1, 128], strides = [1, 1]} : vector<9x128xf32> to vector<1x128xf32>
    %59 = vector.broadcast %58 : vector<1x128xf32> to vector<8x128xf32>
    %60 = arith.mulf %57, %59 : vector<8x128xf32>
    %c8_i32_27 = arith.constant 8 : i32
    %61 = tpu.dynamic_rotate %50 by %c8_i32_27 dim 1 : vector<8x128xf32>, i32 -> vector<8x128xf32>
    %62 = vector.extract_strided_slice %7 {offsets = [2, 0], sizes = [1, 128], strides = [1, 1]} : vector<9x128xf32> to vector<1x128xf32>
    %63 = vector.broadcast %62 : vector<1x128xf32> to vector<8x128xf32>
    %64 = arith.mulf %61, %63 : vector<8x128xf32>
    %c2_i32_28 = arith.constant 2 : i32
    %65 = tpu.dynamic_rotate %50 by %c2_i32_28 dim 1 : vector<8x128xf32>, i32 -> vector<8x128xf32>
    %66 = vector.extract_strided_slice %7 {offsets = [3, 0], sizes = [1, 128], strides = [1, 1]} : vector<9x128xf32> to vector<1x128xf32>
    %67 = vector.broadcast %66 : vector<1x128xf32> to vector<8x128xf32>
    %68 = arith.mulf %65, %67 : vector<8x128xf32>
    %c1_i32_29 = arith.constant 1 : i32
    %69 = tpu.dynamic_rotate %50 by %c1_i32_29 dim 1 : vector<8x128xf32>, i32 -> vector<8x128xf32>
    %70 = vector.extract_strided_slice %7 {offsets = [4, 0], sizes = [1, 128], strides = [1, 1]} : vector<9x128xf32> to vector<1x128xf32>
    %71 = vector.broadcast %70 : vector<1x128xf32> to vector<8x128xf32>
    %72 = arith.mulf %69, %71 : vector<8x128xf32>
    %c122_i32_30 = arith.constant 122 : i32
    %73 = tpu.dynamic_rotate %50 by %c122_i32_30 dim 1 : vector<8x128xf32>, i32 -> vector<8x128xf32>
    %74 = vector.extract_strided_slice %7 {offsets = [6, 0], sizes = [1, 128], strides = [1, 1]} : vector<9x128xf32> to vector<1x128xf32>
    %75 = vector.broadcast %74 : vector<1x128xf32> to vector<8x128xf32>
    %76 = arith.mulf %73, %75 : vector<8x128xf32>
    %c121_i32_31 = arith.constant 121 : i32
    %77 = tpu.dynamic_rotate %50 by %c121_i32_31 dim 1 : vector<8x128xf32>, i32 -> vector<8x128xf32>
    %78 = vector.extract_strided_slice %7 {offsets = [7, 0], sizes = [1, 128], strides = [1, 1]} : vector<9x128xf32> to vector<1x128xf32>
    %79 = vector.broadcast %78 : vector<1x128xf32> to vector<8x128xf32>
    %80 = arith.mulf %77, %79 : vector<8x128xf32>
    %c120_i32_32 = arith.constant 120 : i32
    %81 = tpu.dynamic_rotate %50 by %c120_i32_32 dim 1 : vector<8x128xf32>, i32 -> vector<8x128xf32>
    %82 = vector.extract_strided_slice %7 {offsets = [8, 0], sizes = [1, 128], strides = [1, 1]} : vector<9x128xf32> to vector<1x128xf32>
    %83 = vector.broadcast %82 : vector<1x128xf32> to vector<8x128xf32>
    %84 = arith.mulf %81, %83 : vector<8x128xf32>
    %85 = tpu.concatenate %56, %60, %64, %68, %72, %50, %76, %80, %84, %9 in 0 : vector<8x128xf32>, vector<8x128xf32>, vector<8x128xf32>, vector<8x128xf32>, vector<8x128xf32>, vector<8x128xf32>, vector<8x128xf32>, vector<8x128xf32>, vector<8x128xf32>, vector<8x128xf32> -> vector<80x128xf32>
    %cst_33 = arith.constant dense<0.000000e+00> : vector<8x128xf32>
    %86 = tpu.matmul %52, %85, %cst_33 {dimension_numbers = #tpu.dot_dimension_numbers<[1], [0], [0], [1], [0, 0, 1, 1], [], []>} : vector<8x80xf32>, vector<80x128xf32>, vector<8x128xf32> -> vector<8x128xf32>
    %87 = vector.extract_strided_slice %11 {offsets = [0, 0], sizes = [8, 128], strides = [1, 1]} : vector<16x128xf32> to vector<8x128xf32>
    %88 = vector.extract_strided_slice %11 {offsets = [8, 0], sizes = [8, 128], strides = [1, 1]} : vector<16x128xf32> to vector<8x128xf32>
    %89 = arith.mulf %86, %86 : vector<8x128xf32>
    %90 = tpu.concatenate %86, %89 in 0 : vector<8x128xf32>, vector<8x128xf32> -> vector<16x128xf32>
    %cst_34 = arith.constant dense<0.000000e+00> : vector<16x8xf32>
    %91 = tpu.matmul %90, %5, %cst_34 {dimension_numbers = #tpu.dot_dimension_numbers<[1], [0], [0], [1], [0, 0, 1, 1], [], []>} : vector<16x128xf32>, vector<128x8xf32>, vector<16x8xf32> -> vector<16x8xf32>
    %cst_35 = arith.constant dense<0.000000e+00> : vector<16x8xf32>
    %92 = tpu.matmul %8, %91, %cst_35 {dimension_numbers = #tpu.dot_dimension_numbers<[1], [0], [0], [1], [0, 0, 1, 1], [], []>} : vector<16x16xf32>, vector<16x8xf32>, vector<16x8xf32> -> vector<16x8xf32>
    %93 = vector.extract_strided_slice %92 {offsets = [0, 0], sizes = [8, 8], strides = [1, 1]} : vector<16x8xf32> to vector<8x8xf32>
    %94 = vector.extract_strided_slice %92 {offsets = [8, 0], sizes = [8, 8], strides = [1, 1]} : vector<16x8xf32> to vector<8x8xf32>
    %95 = arith.mulf %93, %93 : vector<8x8xf32>
    %96 = arith.subf %94, %95 : vector<8x8xf32>
    %cst_36 = arith.constant 9.99999974E-6 : f32
    %97 = vector.broadcast %cst_36 : f32 to vector<8x8xf32>
    %98 = arith.addf %96, %97 : vector<8x8xf32>
    %99 = math.rsqrt %98 : vector<8x8xf32>
    %100 = tpu.concatenate %93, %99 in 0 : vector<8x8xf32>, vector<8x8xf32> -> vector<16x8xf32>
    %cst_37 = arith.constant dense<0.000000e+00> : vector<16x128xf32>
    %101 = tpu.matmul %100, %6, %cst_37 {dimension_numbers = #tpu.dot_dimension_numbers<[1], [0], [0], [1], [0, 0, 1, 1], [], []>} : vector<16x8xf32>, vector<8x128xf32>, vector<16x128xf32> -> vector<16x128xf32>
    %102 = vector.extract_strided_slice %101 {offsets = [0, 0], sizes = [8, 128], strides = [1, 1]} : vector<16x128xf32> to vector<8x128xf32>
    %103 = arith.subf %86, %102 : vector<8x128xf32>
    %104 = vector.extract_strided_slice %101 {offsets = [8, 0], sizes = [8, 128], strides = [1, 1]} : vector<16x128xf32> to vector<8x128xf32>
    %105 = arith.mulf %103, %104 : vector<8x128xf32>
    %106 = arith.mulf %105, %87 : vector<8x128xf32>
    %107 = arith.addf %106, %88 : vector<8x128xf32>
    %cst_38 = arith.constant dense<0.000000e+00> : vector<8x256xf32>
    %108 = tpu.matmul %107, %4, %cst_38 {dimension_numbers = #tpu.dot_dimension_numbers<[1], [0], [0], [1], [0, 0, 1, 1], [], []>} : vector<8x128xf32>, vector<128x256xf32>, vector<8x256xf32> -> vector<8x256xf32>
    %109 = vector.extract_strided_slice %108 {offsets = [0, 0], sizes = [8, 128], strides = [1, 1]} : vector<8x256xf32> to vector<8x128xf32>
    %110 = vector.extract_strided_slice %108 {offsets = [0, 128], sizes = [8, 128], strides = [1, 1]} : vector<8x256xf32> to vector<8x128xf32>
    %111 = tpu.concatenate %109, %110, %9 in 0 : vector<8x128xf32>, vector<8x128xf32>, vector<8x128xf32> -> vector<24x128xf32>
    %c0_39 = arith.constant 0 : index
    %c0_40 = arith.constant 0 : index
    %c0_41 = arith.constant 0 : index
    %112 = vector.load %arg10[%c0_39, %c0_40, %c0_41] : memref<2x8x24xf32, #tpu.memory_space<vmem>>, vector<1x8x24xf32>
    %113 = vector.shape_cast %112 : vector<1x8x24xf32> to vector<8x24xf32>
    %cst_42 = arith.constant dense<0.000000e+00> : vector<8x128xf32>
    %114 = tpu.matmul %113, %111, %cst_42 {dimension_numbers = #tpu.dot_dimension_numbers<[1], [0], [0], [1], [0, 0, 1, 1], [], []>} : vector<8x24xf32>, vector<24x128xf32>, vector<8x128xf32> -> vector<8x128xf32>
    %115 = arith.addf %114, %107 : vector<8x128xf32>
    %cst_43 = arith.constant 0.000000e+00 : f32
    %116 = vector.broadcast %cst_43 : f32 to vector<8x128xf32>
    %117 = arith.maximumf %115, %116 : vector<8x128xf32>
    %118 = arith.addf %117, %1 : vector<8x128xf32>
    %c1 = arith.constant 1 : index
    %c0_44 = arith.constant 0 : index
    %c0_45 = arith.constant 0 : index
    %119 = vector.load %arg9[%c1, %c0_44, %c0_45] : memref<2x16x128xf32, #tpu.memory_space<vmem>>, vector<1x16x128xf32>
    %120 = vector.shape_cast %119 : vector<1x16x128xf32> to vector<16x128xf32>
    %121 = vector.extract_strided_slice %3 {offsets = [8, 0], sizes = [8, 1], strides = [1, 1]} : vector<16x1xf32> to vector<8x1xf32>
    %c1_46 = arith.constant 1 : index
    %c0_47 = arith.constant 0 : index
    %c0_48 = arith.constant 0 : index
    %122 = vector.load %arg7[%c1_46, %c0_47, %c0_48] : memref<2x8x80xf32, #tpu.memory_space<vmem>>, vector<1x8x80xf32>
    %123 = vector.shape_cast %122 : vector<1x8x80xf32> to vector<8x80xf32>
    %c10_i32_49 = arith.constant 10 : i32
    %124 = tpu.dynamic_rotate %118 by %c10_i32_49 dim 1 : vector<8x128xf32>, i32 -> vector<8x128xf32>
    %125 = vector.extract_strided_slice %7 {offsets = [0, 0], sizes = [1, 128], strides = [1, 1]} : vector<9x128xf32> to vector<1x128xf32>
    %126 = vector.broadcast %125 : vector<1x128xf32> to vector<8x128xf32>
    %127 = arith.mulf %124, %126 : vector<8x128xf32>
    %c9_i32_50 = arith.constant 9 : i32
    %128 = tpu.dynamic_rotate %118 by %c9_i32_50 dim 1 : vector<8x128xf32>, i32 -> vector<8x128xf32>
    %129 = vector.extract_strided_slice %7 {offsets = [1, 0], sizes = [1, 128], strides = [1, 1]} : vector<9x128xf32> to vector<1x128xf32>
    %130 = vector.broadcast %129 : vector<1x128xf32> to vector<8x128xf32>
    %131 = arith.mulf %128, %130 : vector<8x128xf32>
    %c8_i32_51 = arith.constant 8 : i32
    %132 = tpu.dynamic_rotate %118 by %c8_i32_51 dim 1 : vector<8x128xf32>, i32 -> vector<8x128xf32>
    %133 = vector.extract_strided_slice %7 {offsets = [2, 0], sizes = [1, 128], strides = [1, 1]} : vector<9x128xf32> to vector<1x128xf32>
    %134 = vector.broadcast %133 : vector<1x128xf32> to vector<8x128xf32>
    %135 = arith.mulf %132, %134 : vector<8x128xf32>
    %c2_i32_52 = arith.constant 2 : i32
    %136 = tpu.dynamic_rotate %118 by %c2_i32_52 dim 1 : vector<8x128xf32>, i32 -> vector<8x128xf32>
    %137 = vector.extract_strided_slice %7 {offsets = [3, 0], sizes = [1, 128], strides = [1, 1]} : vector<9x128xf32> to vector<1x128xf32>
    %138 = vector.broadcast %137 : vector<1x128xf32> to vector<8x128xf32>
    %139 = arith.mulf %136, %138 : vector<8x128xf32>
    %c1_i32_53 = arith.constant 1 : i32
    %140 = tpu.dynamic_rotate %118 by %c1_i32_53 dim 1 : vector<8x128xf32>, i32 -> vector<8x128xf32>
    %141 = vector.extract_strided_slice %7 {offsets = [4, 0], sizes = [1, 128], strides = [1, 1]} : vector<9x128xf32> to vector<1x128xf32>
    %142 = vector.broadcast %141 : vector<1x128xf32> to vector<8x128xf32>
    %143 = arith.mulf %140, %142 : vector<8x128xf32>
    %c122_i32_54 = arith.constant 122 : i32
    %144 = tpu.dynamic_rotate %118 by %c122_i32_54 dim 1 : vector<8x128xf32>, i32 -> vector<8x128xf32>
    %145 = vector.extract_strided_slice %7 {offsets = [6, 0], sizes = [1, 128], strides = [1, 1]} : vector<9x128xf32> to vector<1x128xf32>
    %146 = vector.broadcast %145 : vector<1x128xf32> to vector<8x128xf32>
    %147 = arith.mulf %144, %146 : vector<8x128xf32>
    %c121_i32_55 = arith.constant 121 : i32
    %148 = tpu.dynamic_rotate %118 by %c121_i32_55 dim 1 : vector<8x128xf32>, i32 -> vector<8x128xf32>
    %149 = vector.extract_strided_slice %7 {offsets = [7, 0], sizes = [1, 128], strides = [1, 1]} : vector<9x128xf32> to vector<1x128xf32>
    %150 = vector.broadcast %149 : vector<1x128xf32> to vector<8x128xf32>
    %151 = arith.mulf %148, %150 : vector<8x128xf32>
    %c120_i32_56 = arith.constant 120 : i32
    %152 = tpu.dynamic_rotate %118 by %c120_i32_56 dim 1 : vector<8x128xf32>, i32 -> vector<8x128xf32>
    %153 = vector.extract_strided_slice %7 {offsets = [8, 0], sizes = [1, 128], strides = [1, 1]} : vector<9x128xf32> to vector<1x128xf32>
    %154 = vector.broadcast %153 : vector<1x128xf32> to vector<8x128xf32>
    %155 = arith.mulf %152, %154 : vector<8x128xf32>
    %156 = tpu.concatenate %127, %131, %135, %139, %143, %118, %147, %151, %155, %9 in 0 : vector<8x128xf32>, vector<8x128xf32>, vector<8x128xf32>, vector<8x128xf32>, vector<8x128xf32>, vector<8x128xf32>, vector<8x128xf32>, vector<8x128xf32>, vector<8x128xf32>, vector<8x128xf32> -> vector<80x128xf32>
    %cst_57 = arith.constant dense<0.000000e+00> : vector<8x128xf32>
    %157 = tpu.matmul %123, %156, %cst_57 {dimension_numbers = #tpu.dot_dimension_numbers<[1], [0], [0], [1], [0, 0, 1, 1], [], []>} : vector<8x80xf32>, vector<80x128xf32>, vector<8x128xf32> -> vector<8x128xf32>
    %158 = vector.broadcast %121 : vector<8x1xf32> to vector<8x128xf32>
    %159 = arith.addf %157, %158 : vector<8x128xf32>
    %c1_58 = arith.constant 1 : index
    %c0_59 = arith.constant 0 : index
    %c0_60 = arith.constant 0 : index
    %160 = vector.load %arg8[%c1_58, %c0_59, %c0_60] : memref<2x8x80xf32, #tpu.memory_space<vmem>>, vector<1x8x80xf32>
    %161 = vector.shape_cast %160 : vector<1x8x80xf32> to vector<8x80xf32>
    %c10_i32_61 = arith.constant 10 : i32
    %162 = tpu.dynamic_rotate %159 by %c10_i32_61 dim 1 : vector<8x128xf32>, i32 -> vector<8x128xf32>
    %163 = vector.extract_strided_slice %7 {offsets = [0, 0], sizes = [1, 128], strides = [1, 1]} : vector<9x128xf32> to vector<1x128xf32>
    %164 = vector.broadcast %163 : vector<1x128xf32> to vector<8x128xf32>
    %165 = arith.mulf %162, %164 : vector<8x128xf32>
    %c9_i32_62 = arith.constant 9 : i32
    %166 = tpu.dynamic_rotate %159 by %c9_i32_62 dim 1 : vector<8x128xf32>, i32 -> vector<8x128xf32>
    %167 = vector.extract_strided_slice %7 {offsets = [1, 0], sizes = [1, 128], strides = [1, 1]} : vector<9x128xf32> to vector<1x128xf32>
    %168 = vector.broadcast %167 : vector<1x128xf32> to vector<8x128xf32>
    %169 = arith.mulf %166, %168 : vector<8x128xf32>
    %c8_i32_63 = arith.constant 8 : i32
    %170 = tpu.dynamic_rotate %159 by %c8_i32_63 dim 1 : vector<8x128xf32>, i32 -> vector<8x128xf32>
    %171 = vector.extract_strided_slice %7 {offsets = [2, 0], sizes = [1, 128], strides = [1, 1]} : vector<9x128xf32> to vector<1x128xf32>
    %172 = vector.broadcast %171 : vector<1x128xf32> to vector<8x128xf32>
    %173 = arith.mulf %170, %172 : vector<8x128xf32>
    %c2_i32_64 = arith.constant 2 : i32
    %174 = tpu.dynamic_rotate %159 by %c2_i32_64 dim 1 : vector<8x128xf32>, i32 -> vector<8x128xf32>
    %175 = vector.extract_strided_slice %7 {offsets = [3, 0], sizes = [1, 128], strides = [1, 1]} : vector<9x128xf32> to vector<1x128xf32>
    %176 = vector.broadcast %175 : vector<1x128xf32> to vector<8x128xf32>
    %177 = arith.mulf %174, %176 : vector<8x128xf32>
    %c1_i32_65 = arith.constant 1 : i32
    %178 = tpu.dynamic_rotate %159 by %c1_i32_65 dim 1 : vector<8x128xf32>, i32 -> vector<8x128xf32>
    %179 = vector.extract_strided_slice %7 {offsets = [4, 0], sizes = [1, 128], strides = [1, 1]} : vector<9x128xf32> to vector<1x128xf32>
    %180 = vector.broadcast %179 : vector<1x128xf32> to vector<8x128xf32>
    %181 = arith.mulf %178, %180 : vector<8x128xf32>
    %c122_i32_66 = arith.constant 122 : i32
    %182 = tpu.dynamic_rotate %159 by %c122_i32_66 dim 1 : vector<8x128xf32>, i32 -> vector<8x128xf32>
    %183 = vector.extract_strided_slice %7 {offsets = [6, 0], sizes = [1, 128], strides = [1, 1]} : vector<9x128xf32> to vector<1x128xf32>
    %184 = vector.broadcast %183 : vector<1x128xf32> to vector<8x128xf32>
    %185 = arith.mulf %182, %184 : vector<8x128xf32>
    %c121_i32_67 = arith.constant 121 : i32
    %186 = tpu.dynamic_rotate %159 by %c121_i32_67 dim 1 : vector<8x128xf32>, i32 -> vector<8x128xf32>
    %187 = vector.extract_strided_slice %7 {offsets = [7, 0], sizes = [1, 128], strides = [1, 1]} : vector<9x128xf32> to vector<1x128xf32>
    %188 = vector.broadcast %187 : vector<1x128xf32> to vector<8x128xf32>
    %189 = arith.mulf %186, %188 : vector<8x128xf32>
    %c120_i32_68 = arith.constant 120 : i32
    %190 = tpu.dynamic_rotate %159 by %c120_i32_68 dim 1 : vector<8x128xf32>, i32 -> vector<8x128xf32>
    %191 = vector.extract_strided_slice %7 {offsets = [8, 0], sizes = [1, 128], strides = [1, 1]} : vector<9x128xf32> to vector<1x128xf32>
    %192 = vector.broadcast %191 : vector<1x128xf32> to vector<8x128xf32>
    %193 = arith.mulf %190, %192 : vector<8x128xf32>
    %194 = tpu.concatenate %165, %169, %173, %177, %181, %159, %185, %189, %193, %9 in 0 : vector<8x128xf32>, vector<8x128xf32>, vector<8x128xf32>, vector<8x128xf32>, vector<8x128xf32>, vector<8x128xf32>, vector<8x128xf32>, vector<8x128xf32>, vector<8x128xf32>, vector<8x128xf32> -> vector<80x128xf32>
    %cst_69 = arith.constant dense<0.000000e+00> : vector<8x128xf32>
    %195 = tpu.matmul %161, %194, %cst_69 {dimension_numbers = #tpu.dot_dimension_numbers<[1], [0], [0], [1], [0, 0, 1, 1], [], []>} : vector<8x80xf32>, vector<80x128xf32>, vector<8x128xf32> -> vector<8x128xf32>
    %196 = vector.extract_strided_slice %120 {offsets = [0, 0], sizes = [8, 128], strides = [1, 1]} : vector<16x128xf32> to vector<8x128xf32>
    %197 = vector.extract_strided_slice %120 {offsets = [8, 0], sizes = [8, 128], strides = [1, 1]} : vector<16x128xf32> to vector<8x128xf32>
    %198 = arith.mulf %195, %195 : vector<8x128xf32>
    %199 = tpu.concatenate %195, %198 in 0 : vector<8x128xf32>, vector<8x128xf32> -> vector<16x128xf32>
    %cst_70 = arith.constant dense<0.000000e+00> : vector<16x8xf32>
    %200 = tpu.matmul %199, %5, %cst_70 {dimension_numbers = #tpu.dot_dimension_numbers<[1], [0], [0], [1], [0, 0, 1, 1], [], []>} : vector<16x128xf32>, vector<128x8xf32>, vector<16x8xf32> -> vector<16x8xf32>
    %cst_71 = arith.constant dense<0.000000e+00> : vector<16x8xf32>
    %201 = tpu.matmul %8, %200, %cst_71 {dimension_numbers = #tpu.dot_dimension_numbers<[1], [0], [0], [1], [0, 0, 1, 1], [], []>} : vector<16x16xf32>, vector<16x8xf32>, vector<16x8xf32> -> vector<16x8xf32>
    %202 = vector.extract_strided_slice %201 {offsets = [0, 0], sizes = [8, 8], strides = [1, 1]} : vector<16x8xf32> to vector<8x8xf32>
    %203 = vector.extract_strided_slice %201 {offsets = [8, 0], sizes = [8, 8], strides = [1, 1]} : vector<16x8xf32> to vector<8x8xf32>
    %204 = arith.mulf %202, %202 : vector<8x8xf32>
    %205 = arith.subf %203, %204 : vector<8x8xf32>
    %cst_72 = arith.constant 9.99999974E-6 : f32
    %206 = vector.broadcast %cst_72 : f32 to vector<8x8xf32>
    %207 = arith.addf %205, %206 : vector<8x8xf32>
    %208 = math.rsqrt %207 : vector<8x8xf32>
    %209 = tpu.concatenate %202, %208 in 0 : vector<8x8xf32>, vector<8x8xf32> -> vector<16x8xf32>
    %cst_73 = arith.constant dense<0.000000e+00> : vector<16x128xf32>
    %210 = tpu.matmul %209, %6, %cst_73 {dimension_numbers = #tpu.dot_dimension_numbers<[1], [0], [0], [1], [0, 0, 1, 1], [], []>} : vector<16x8xf32>, vector<8x128xf32>, vector<16x128xf32> -> vector<16x128xf32>
    %211 = vector.extract_strided_slice %210 {offsets = [0, 0], sizes = [8, 128], strides = [1, 1]} : vector<16x128xf32> to vector<8x128xf32>
    %212 = arith.subf %195, %211 : vector<8x128xf32>
    %213 = vector.extract_strided_slice %210 {offsets = [8, 0], sizes = [8, 128], strides = [1, 1]} : vector<16x128xf32> to vector<8x128xf32>
    %214 = arith.mulf %212, %213 : vector<8x128xf32>
    %215 = arith.mulf %214, %196 : vector<8x128xf32>
    %216 = arith.addf %215, %197 : vector<8x128xf32>
    %cst_74 = arith.constant dense<0.000000e+00> : vector<8x256xf32>
    %217 = tpu.matmul %216, %4, %cst_74 {dimension_numbers = #tpu.dot_dimension_numbers<[1], [0], [0], [1], [0, 0, 1, 1], [], []>} : vector<8x128xf32>, vector<128x256xf32>, vector<8x256xf32> -> vector<8x256xf32>
    %218 = vector.extract_strided_slice %217 {offsets = [0, 0], sizes = [8, 128], strides = [1, 1]} : vector<8x256xf32> to vector<8x128xf32>
    %219 = vector.extract_strided_slice %217 {offsets = [0, 128], sizes = [8, 128], strides = [1, 1]} : vector<8x256xf32> to vector<8x128xf32>
    %220 = tpu.concatenate %218, %219, %9 in 0 : vector<8x128xf32>, vector<8x128xf32>, vector<8x128xf32> -> vector<24x128xf32>
    %c1_75 = arith.constant 1 : index
    %c0_76 = arith.constant 0 : index
    %c0_77 = arith.constant 0 : index
    %221 = vector.load %arg10[%c1_75, %c0_76, %c0_77] : memref<2x8x24xf32, #tpu.memory_space<vmem>>, vector<1x8x24xf32>
    %222 = vector.shape_cast %221 : vector<1x8x24xf32> to vector<8x24xf32>
    %cst_78 = arith.constant dense<0.000000e+00> : vector<8x128xf32>
    %223 = tpu.matmul %222, %220, %cst_78 {dimension_numbers = #tpu.dot_dimension_numbers<[1], [0], [0], [1], [0, 0, 1, 1], [], []>} : vector<8x24xf32>, vector<24x128xf32>, vector<8x128xf32> -> vector<8x128xf32>
    %224 = arith.addf %223, %216 : vector<8x128xf32>
    %cst_79 = arith.constant 0.000000e+00 : f32
    %225 = vector.broadcast %cst_79 : f32 to vector<8x128xf32>
    %226 = arith.maximumf %224, %225 : vector<8x128xf32>
    %227 = arith.addf %226, %118 : vector<8x128xf32>
    %c0_80 = arith.constant 0 : index
    %c0_81 = arith.constant 0 : index
    %c0_82 = arith.constant 0 : index
    %228 = vector.load %arg12[%c0_80, %c0_81, %c0_82] : memref<1x8x128xf32, #tpu.memory_space<vmem>>, vector<1x8x128xf32>
    %229 = vector.shape_cast %228 : vector<1x8x128xf32> to vector<8x128xf32>
    %230 = vector.shape_cast %227 : vector<8x128xf32> to vector<1x8x128xf32>
    tpu.vector_store %arg12[%c0_80, %c0_81, %c0_82], %230 {strides = array<i32>} : memref<1x8x128xf32, #tpu.memory_space<vmem>>, vector<1x8x128xf32>,
    return
  }
  func.func @transform_0(%arg0: i32) -> (i32, i32, i32) {
    %c0_i32 = arith.constant 0 : i32
    %c0_i32_0 = arith.constant 0 : i32
    %c0_i32_1 = arith.constant 0 : i32
    return %arg0, %c0_i32, %c0_i32_0 : i32, i32, i32
  }
  func.func @transform_1(%arg0: i32) -> (i32, i32, i32) {
    %c0_i32 = arith.constant 0 : i32
    %c0_i32_0 = arith.constant 0 : i32
    %c0_i32_1 = arith.constant 0 : i32
    return %arg0, %c0_i32, %c0_i32_0 : i32, i32, i32
  }
  func.func @transform_2(%arg0: i32) -> (i32, i32) {
    %c0_i32 = arith.constant 0 : i32
    %c0_i32_0 = arith.constant 0 : i32
    %c0_i32_1 = arith.constant 0 : i32
    return %c0_i32, %c0_i32_0 : i32, i32
  }
  func.func @transform_3(%arg0: i32) -> (i32, i32) {
    %c0_i32 = arith.constant 0 : i32
    %c0_i32_0 = arith.constant 0 : i32
    %c0_i32_1 = arith.constant 0 : i32
    return %c0_i32, %c0_i32_0 : i32, i32
  }
  func.func @transform_4(%arg0: i32) -> (i32, i32) {
    %c0_i32 = arith.constant 0 : i32
    %c0_i32_0 = arith.constant 0 : i32
    %c0_i32_1 = arith.constant 0 : i32
    return %c0_i32, %c0_i32_0 : i32, i32
  }
  func.func @transform_5(%arg0: i32) -> (i32, i32) {
    %c0_i32 = arith.constant 0 : i32
    %c0_i32_0 = arith.constant 0 : i32
    %c0_i32_1 = arith.constant 0 : i32
    return %c0_i32, %c0_i32_0 : i32, i32
  }
  func.func @transform_6(%arg0: i32) -> (i32, i32, i32) {
    %c0_i32 = arith.constant 0 : i32
    %c0_i32_0 = arith.constant 0 : i32
    %c0_i32_1 = arith.constant 0 : i32
    %c0_i32_2 = arith.constant 0 : i32
    return %c0_i32, %c0_i32_0, %c0_i32_1 : i32, i32, i32
  }
  func.func @transform_7(%arg0: i32) -> (i32, i32, i32) {
    %c0_i32 = arith.constant 0 : i32
    %c0_i32_0 = arith.constant 0 : i32
    %c0_i32_1 = arith.constant 0 : i32
    %c0_i32_2 = arith.constant 0 : i32
    return %c0_i32, %c0_i32_0, %c0_i32_1 : i32, i32, i32
  }
  func.func @transform_8(%arg0: i32) -> (i32, i32, i32) {
    %c0_i32 = arith.constant 0 : i32
    %c0_i32_0 = arith.constant 0 : i32
    %c0_i32_1 = arith.constant 0 : i32
    %c0_i32_2 = arith.constant 0 : i32
    return %c0_i32, %c0_i32_0, %c0_i32_1 : i32, i32, i32
  }
  func.func @transform_9(%arg0: i32) -> (i32, i32, i32) {
    %c0_i32 = arith.constant 0 : i32
    %c0_i32_0 = arith.constant 0 : i32
    %c0_i32_1 = arith.constant 0 : i32
    %c0_i32_2 = arith.constant 0 : i32
    return %c0_i32, %c0_i32_0, %c0_i32_1 : i32, i32, i32
  }
  func.func @transform_10(%arg0: i32) -> (i32, i32) {
    %c0_i32 = arith.constant 0 : i32
    %c0_i32_0 = arith.constant 0 : i32
    %c0_i32_1 = arith.constant 0 : i32
    return %c0_i32, %c0_i32_0 : i32, i32
  }
  func.func @transform_11(%arg0: i32) -> (i32, i32, i32) {
    %c0_i32 = arith.constant 0 : i32
    %c0_i32_0 = arith.constant 0 : i32
    %c0_i32_1 = arith.constant 0 : i32
    return %arg0, %c0_i32, %c0_i32_0 : i32, i32, i32
  }
}

</mosaic_0001>

<bundles_post_ra>
// kernel: middle_block_apply.1
= control target key start
LH: loop header
LB: loop body
LE: loop exit
PB: predicated region body
PF: predicated region fallthrough
CT: control target
= control target key end

     0   :  { %16 = vsyncpa [#allocation3], 0  ;;  %s2420_s0 = inlined_call_operand.vmem [shape: f32[1,8,128], index: 0, kind: input, shape index: {}]   ;;  %s2421_s1 = inlined_call_operand.vmem [shape: f32[1,16,1], index: 1, kind: input, shape index: {}]   ;;  %s2422_s2 = inlined_call_operand.vmem [shape: f32[128,256], index: 2, kind: input, shape index: {}]   ;;  %s2423_s3 = inlined_call_operand.hbm [shape: f32[128,8], index: 3, kind: input, shape index: {}]   ;;  %s2424_s4 = inlined_call_operand.vmem [shape: f32[8,128], index: 4, kind: input, shape index: {}]   ;;  %s2425_s5 = inlined_call_operand.hbm [shape: f32[9,128], index: 5, kind: input, shape index: {}]   ;;  %s2426_s6 = inlined_call_operand.vmem [shape: f32[2,8,80], index: 6, kind: input, shape index: {}]   ;;  %s2427_s7 = inlined_call_operand.vmem [shape: f32[2,8,80], index: 7, kind: input, shape index: {}]   ;;  %s2428_s8 = inlined_call_operand.vmem [shape: f32[2,16,128], index: 8, kind: input, shape index: {}]   ;;  %s2429_s9 = inlined_call_operand.vmem [shape: f32[2,8,24], index: 9, kind: input, shape index: {}]   ;;  %s2430_s10 = inlined_call_operand.vmem [shape: f32[16,16], index: 10, kind: input, shape index: {}]   ;;  %s2431_s11 = inlined_call_operand.vmem [shape: f32[1,8,128], index: 11, kind: output, shape index: {}]  }
   0x1   :  { %17 = vsyncpa [#allocation5], 0  ;;  %s1745_s17 = smov [#allocation2]  }
   0x2   :  { %s29_s18 = sshll.u32 %s1745_s17, 4  ;;  %s30_s18 = int_to_ptr.vmem [resolvable:$true] %s29_s18 }
   0x3   :  { %s1709_s19 = scalar_lea.vmem %s30_s18, 2048  ;;  %p1714_p1 = scmp.lt.s32.totalorder %s30_s18, %s30_s18 }
   0x4   :  { %p1710_p0 = scmp.ne.s32.totalorder %s30_s18, %s1709_s19  ;;  %p1715_p2 = scmp.lt.s32.totalorder %s1709_s19, %s1709_s19 }
   0x6   :  { %p1716_p3 = por %p1715_p2, %p1714_p1 }
   0x8   :  { %p1717_p4 = pnand %p1716_p3, %p1710_p0 }
   0xa   :  { %1720 = shalt.err (!%p1717_p4)
}
   0xb   :  { %s1746_s20 = smov 128   ;;  %s1747_s21 = smov 8  }
   0xc   :  { %35 = dma.hbm_to_vmem [thread:$0]  %s2423_s3, 2048, %s30_s18, [#allocation3], %s1746_s20, %s1746_s20, %s1747_s21  }
   0xd   :  { %s1748_s24 = smov [#allocation4]  }
   0xe   :  { %s43_s25 = sshll.u32 %s1748_s24, 4  ;;  %s44_s25 = int_to_ptr.vmem [resolvable:$true] %s43_s25 }
   0xf   :  { %s1729_s26 = scalar_lea.vmem %s44_s25, 256  ;;  %p1734_p6 = scmp.lt.s32.totalorder %s44_s25, %s44_s25 }
  0x10   :  { %p1730_p5 = scmp.ne.s32.totalorder %s44_s25, %s1729_s26  ;;  %p1735_p7 = scmp.lt.s32.totalorder %s1729_s26, %s1729_s26 }
  0x12   :  { %p1736_p8 = por %p1735_p7, %p1734_p6 }
  0x14   :  { %p1737_p9 = pnand %p1736_p8, %p1730_p5 }
  0x16   :  { %1740 = shalt.err (!%p1737_p9)
}
  0x17   :  { %49 = dma.hbm_to_vmem [thread:$0]  %s2425_s5, 256, %s44_s25, [#allocation5], %s1746_s20, %s1746_s20, %s1747_s21  }
  0x18   :  { %1741 = dma.done.wait [#allocation3], 2048  }
  0x19   :  { %1742 = vsyncadd [#allocation3], 4294965248 }
  0x1a   :  { %1743 = dma.done.wait [#allocation5], 256  }
  0x1b   :  { %1744 = vsyncadd [#allocation5], 4294967040  ;;  %v1749_v0 = vmov 0.0   ;;  %v2432_v1 = vmov 1.0   ;;  %v1837_v2 = vld [vmem:[%s2420_s0] sm:$0xff]  ;;  %s1751_s29 = smov 120   ;;  %v127_v5 = vlaneseq }
  0x1c   :  { %1477 = vmatprep.subr.mxu0 %v1749_v0  ;;  %1500 = vmatprep.subr.mxu1 %v1749_v0  ;;  %s1752_s30 = smov 122   ;;  %s1753_s12 = smov 121   ;;  %vm1755_vm0 = vmmov 0   ;;  %v1757_v3 = vmov 0   ;;  %v67_v4 = vld [vmem:[%s2421_s1] sm:$0xff]  ;;  %vm186_vm1 = vcmask 654336  }
  0x1d   :  { %1478 = vmatpush3.msra.mxu0 %v2432_v1  ;;  %1501 = vmatpush3.msra.mxu1 %v2432_v1  ;;  %s1754_s13 = smov 1   ;;  %s1756_s0 = smov 2   ;;  %v128_v6 = vshrl.u32 %v127_v5, 7  ;;  %v1862_v9 = vld [vmem:[#allocation4 + $0x8] ss:$0 sm:$0xff]  ;;  %v118_v10 = vld [vmem:[#allocation4] sm:$0xff] }
  0x1e   :  { %1479 = vmatprep.subr.mxu0 %v1749_v0  ;;  %1502 = vmatprep.subr.mxu1 %v1749_v0  ;;  %s1758_s14 = smov 9   ;;  %s1759_s15 = smov 10   ;;  %v124_v39 = vld [vmem:[%s2426_s6] sm:$0xff]  ;;  %v1913_v44 = vld [vmem:[#allocation2 + $0x78] sm:$0xff]  ;;  %v1915_v45 = vld [vmem:[#allocation2 + $0x70] sm:$0xff]  ;;  %vm434_vm2 = vcmask 130048  }
  0x1f   :  { %174 = vrot.lane.b32.xlu0 %v1837_v2, %s1751_s29  ;;  %160 = vrot.lane.b32.xlu1 %v1837_v2, %s1752_s30  ;;  %v171_v7 = vsub.s32 7, %v128_v6  ;;  %v164_v8 = vsub.s32 6, %v128_v6  ;;  %v157_v16 = vsub.s32 4, %v128_v6  ;;  %v150_v17 = vsub.s32 3, %v128_v6  ;;  %v1919_v46 = vld [vmem:[#allocation2 + $0x68] sm:$0xff]  ;;  %v1925_v47 = vld [vmem:[#allocation2 + $0x60] sm:$0xff] }
  0x20   :  { %1497 = vmatprep.mubr.msk.f32.mxu0 %vm1755_vm0, %v1749_v0  ;;  %1520 = vmatprep.mubr.msk.f32.mxu1 %vm1755_vm0, %v1749_v0  ;;  %v143_v23 = vsub.s32 2, %v128_v6  ;;  %v136_v25 = vsub.s32 1, %v128_v6  ;;  %v129_v30 = vsub.s32 0, %v128_v6  ;;  %v1929_v48 = vld [vmem:[#allocation2 + $0x58] sm:$0xff]  ;;  %v1935_v49 = vld [vmem:[#allocation2 + $0x50] sm:$0xff]  ;;  %v1939_v50 = vld [vmem:[#allocation2 + $0x48] sm:$0xff] }
  0x21   :  { %1696 = vset.pattern.permute.xlu0 %v1757_v3  ;;  %v1865_v14 = vrot.slane %v118_v10, %v171_v7  ;;  %v1867_v15 = vrot.slane %v118_v10, %v164_v8  ;;  %v1872_v22 = vrot.slane %v118_v10, %v157_v16  ;;  %v1874_v24 = vrot.slane %v118_v10, %v150_v17  ;;  %v1943_v51 = vld [vmem:[#allocation2 + $0x40] sm:$0xff]  ;;  %v1947_v52 = vld [vmem:[#allocation2 + $0x38] sm:$0xff]  ;;  %v1951_v53 = vld [vmem:[#allocation2 + $0x30] sm:$0xff] }
  0x22   :  { %v1878_v29 = vrot.slane %v118_v10, %v143_v23  ;;  %v1883_v32 = vrot.slane %v118_v10, %v136_v25  ;;  %v1887_v35 = vrot.slane %v118_v10, %v129_v30  ;;  %v1955_v54 = vld [vmem:[#allocation2 + $0x28] sm:$0xff]  ;;  %v1959_v55 = vld [vmem:[#allocation2 + $0x20] sm:$0xff]  ;;  %v1963_v56 = vld [vmem:[#allocation2 + $0x18] sm:$0xff]  ;;  %vm520_vm3 = vcmask 64512  }
  0x23   :  { %167 = vrot.lane.b32.xlu0 %v1837_v2, %s1753_s12  ;;  %153 = vrot.lane.b32.xlu1 %v1837_v2, %s1754_s13  ;;  %v1967_v57 = vld [vmem:[#allocation2 + $0x10] sm:$0xff]  ;;  %v1971_v58 = vld [vmem:[#allocation2 + $0x8] sm:$0xff]  ;;  %v260_v17 = vld [vmem:[%s2427_s7] sm:$0xff]  ;;  %vm678_vm4 = vcmask 195584  }
  0x24   :  { %v2015_v23 = vld [vmem:[%s2430_s10] sm:$0xff]  ;;  %v2036_v30 = vld [vmem:[%s2422_s2 + $0xf8] sm:$0xff] }
  0x27   :  { %146 = vrot.lane.b32.xlu0 %v1837_v2, %s1756_s0  ;;  %139 = vrot.lane.b32.xlu1 %v1837_v2, %s1747_s21 }
  0x2b   :  { %132 = vrot.lane.b32.xlu0 %v1837_v2, %s1758_s14  ;;  %125 = vrot.lane.b32.xlu1 %v1837_v2, %s1759_s15 }
  0x2f   :  { %183 = vperm.xlu0 %1696, %v67_v4  }
  0x91   :  { %v175_v11 = vpop.permute.xlu0 %174  ;;  %v161_v12 = vpop.permute.xlu1 %160 }
  0x92   :  { %v180_v13 = vmul.f32 %v1862_v9, %v175_v11  ;;  %v166_v21 = vmul.f32 %v1867_v15, %v161_v12 }
  0x94   :  { %1480 = vmatpush3.msra.mxu0 %v180_v13 }
  0x95   :  { %v168_v18 = vpop.permute.xlu0 %167  ;;  %1481 = vmatprep.subr.mxu0 %v1749_v0  ;;  %v154_v19 = vpop.permute.xlu1 %153 }
  0x96   :  { %v173_v20 = vmul.f32 %v1865_v14, %v168_v18  ;;  %v159_v28 = vmul.f32 %v1872_v22, %v154_v19  ;;  %v1998_v18 = vld [vmem:[#allocation2] sm:$0xff] }
  0x98   :  { %1482 = vmatpush3.msra.mxu0 %v173_v20 }
  0x99   :  { %1483 = vmatprep.subr.mxu0 %v1749_v0  ;;  %v147_v26 = vpop.permute.xlu0 %146  ;;  %v140_v27 = vpop.permute.xlu1 %139 }
  0x9a   :  { %1484 = vmatpush3.msra.mxu0 %v166_v21  ;;  %v152_v31 = vmul.f32 %v1874_v24, %v147_v26  ;;  %v145_v34 = vmul.f32 %v1878_v29, %v140_v27  ;;  %v2022_v27 = vld [vmem:[%s2430_s10 + $0x8] sm:$0xff] }
  0x9b   :  { %1485 = vmatprep.subr.mxu0 %v1749_v0 }
  0x9c   :  { %1486 = vmatpush3.msra.mxu0 %v1837_v2 }
  0x9d   :  { %1487 = vmatprep.subr.mxu0 %v1749_v0  ;;  %v133_v33 = vpop.permute.xlu0 %132  ;;  %v126_v36 = vpop.permute.xlu1 %125 }
  0x9e   :  { %1488 = vmatpush3.msra.mxu0 %v159_v28  ;;  %v138_v37 = vmul.f32 %v1883_v32, %v133_v33  ;;  %v131_v38 = vmul.f32 %v1887_v35, %v126_v36  ;;  %v2029_v28 = vld [vmem:[%s2424_s4] sm:$0xff] }
  0x9f   :  { %1489 = vmatprep.subr.mxu0 %v1749_v0 }
  0xa0   :  { %1490 = vmatpush3.msra.mxu0 %v152_v31 }
  0xa1   :  { %1491 = vmatprep.subr.mxu0 %v1749_v0 }
  0xa2   :  { %1492 = vmatpush3.msra.mxu0 %v145_v34 }
  0xa3   :  { %1493 = vmatprep.subr.mxu0 %v1749_v0 }
  0xa4   :  { %1494 = vmatpush3.msra.mxu0 %v138_v37 }
  0xa5   :  { %1495 = vmatprep.subr.mxu0 %v1749_v0 }
  0xa6   :  { %1496 = vmatpush3.msra.mxu0 %v131_v38  ;;  %v2043_v38 = vld [vmem:[%s2422_s2 + $0xf0] sm:$0xff] }
  0xa7   :  { %1498 = vmatmul.mubr.msk.f32.vlgmr.msra.gmra.mxu0 %vm186_vm1, %v124_v39  ;;  %1523 = vmatprep.subr.mxu0 %v1913_v44 }
  0xa8   :  { %1524 = vmatpush3.msra.mxu0 %v1913_v44 }
  0xa9   :  { %1525 = vmatprep.subr.mxu0 %v1915_v45 }
  0xaa   :  { %v184_v40 = vpop.permute.xlu0 %183  ;;  %1526 = vmatpush3.msra.mxu0 %v1915_v45 }
  0xab   :  { %1527 = vmatprep.subr.mxu0 %v1919_v46 }
  0xac   :  { %1528 = vmatpush3.msra.mxu0 %v1919_v46 }
  0xad   :  { %1529 = vmatprep.subr.mxu0 %v1925_v47 }
  0xae   :  { %1530 = vmatpush3.msra.mxu0 %v1925_v47 }
  0xaf   :  { %1531 = vmatprep.subr.mxu0 %v1929_v48 }
  0xb0   :  { %1532 = vmatpush3.msra.mxu0 %v1929_v48 }
  0xb1   :  { %1533 = vmatprep.subr.mxu0 %v1935_v49 }
  0xb2   :  { %1534 = vmatpush3.msra.mxu0 %v1935_v49 }
  0xb3   :  { %1535 = vmatprep.subr.mxu0 %v1939_v50 }
  0xb4   :  { %1536 = vmatpush3.msra.mxu0 %v1939_v50 }
  0xb5   :  { %1537 = vmatprep.subr.mxu0 %v1943_v51 }
  0xb6   :  { %1538 = vmatpush3.msra.mxu0 %v1943_v51 }
  0xb7   :  { %1539 = vmatprep.subr.mxu0 %v1947_v52 }
  0xb8   :  { %1540 = vmatpush3.msra.mxu0 %v1947_v52 }
  0xb9   :  { %1541 = vmatprep.subr.mxu0 %v1951_v53 }
  0xba   :  { %1542 = vmatpush3.msra.mxu0 %v1951_v53 }
  0xbb   :  { %1543 = vmatprep.subr.mxu0 %v1955_v54 }
  0xbc   :  { %1544 = vmatpush3.msra.mxu0 %v1955_v54 }
  0xbd   :  { %1545 = vmatprep.subr.mxu0 %v1959_v55 }
  0xbe   :  { %1546 = vmatpush3.msra.mxu0 %v1959_v55 }
  0xbf   :  { %1547 = vmatprep.subr.mxu0 %v1963_v56 }
  0xc0   :  { %1548 = vmatpush3.msra.mxu0 %v1963_v56 }
  0xc1   :  { %1549 = vmatprep.subr.mxu0 %v1967_v57 }
  0xc2   :  { %1550 = vmatpush3.msra.mxu0 %v1967_v57 }
  0xc3   :  { %1551 = vmatprep.subr.mxu0 %v1971_v58 }
  0xc4   :  { %1552 = vmatpush3.msra.mxu0 %v1971_v58 }
  0xc5   :  { %1553 = vmatprep.subr.mxu0 %v1998_v18 }
  0xc6   :  { %1554 = vmatpush3.msra.mxu0 %v1998_v18 }
  0xc7   :  { %1570 = vmatprep.subr.mxu0 %v1749_v0 }
 0x167   :  { %v256_v41 = vpop.f32.mrf.mxu0 }
 0x168   :  { %v1899_v42 = vadd.f32 %v256_v41, %v184_v40  ;;  %v2048_v40 = vld [vmem:[%s2422_s2 + $0xe8] sm:$0xff]  ;;  %v2054_v41 = vld [vmem:[%s2422_s2 + $0xe0] sm:$0xff] }
 0x169   :  { %v1499_v43 = vpop.f32.mrf.mxu0 }
 0x16a   :  { %276 = vrot.lane.b32.xlu0 %v1899_v42, %s1752_s30  ;;  %282 = vrot.lane.b32.xlu1 %v1899_v42, %s1751_s29  ;;  %v2067_v43 = vld [vmem:[%s2422_s2 + $0xd0] sm:$0xff] }
 0x16e   :  { %270 = vrot.lane.b32.xlu0 %v1899_v42, %s1756_s0  ;;  %279 = vrot.lane.b32.xlu1 %v1899_v42, %s1753_s12 }
 0x172   :  { %264 = vrot.lane.b32.xlu0 %v1899_v42, %s1758_s14  ;;  %273 = vrot.lane.b32.xlu1 %v1899_v42, %s1754_s13 }
 0x176   :  { %267 = vrot.lane.b32.xlu1 %v1899_v42, %s1747_s21 }
 0x17a   :  { %261 = vrot.lane.b32.xlu1 %v1899_v42, %s1759_s15 }
 0x1dc   :  { %v283_v59 = vpop.permute.xlu1 %282  ;;  %v277_v61 = vpop.permute.xlu0 %276 }
 0x1dd   :  { %v284_v60 = vmul.f32 %v1862_v9, %v283_v59  ;;  %v278_v3 = vmul.f32 %v277_v61, %v1867_v15  ;;  %v2073_v59 = vld [vmem:[%s2422_s2 + $0xc8] sm:$0xff]  ;;  %v2085_v61 = vld [vmem:[%s2422_s2 + $0xb8] sm:$0xff] }
 0x1df   :  { %1503 = vmatpush3.msra.mxu1 %v284_v60  ;;  %v2079_v60 = vld [vmem:[%s2422_s2 + $0xc0] sm:$0xff] }
 0x1e0   :  { %v280_v62 = vpop.permute.xlu1 %279  ;;  %1504 = vmatprep.subr.mxu1 %v1749_v0  ;;  %v271_v4 = vpop.permute.xlu0 %270 }
 0x1e1   :  { %v281_v63 = vmul.f32 %v280_v62, %v1865_v14  ;;  %v272_v8 = vmul.f32 %v271_v4, %v1874_v24  ;;  %v2091_v62 = vld [vmem:[%s2422_s2 + $0xb0] sm:$0xff]  ;;  %v2109_v4 = vld [vmem:[%s2422_s2 + $0x98] sm:$0xff] }
 0x1e3   :  { %1505 = vmatpush3.msra.mxu1 %v281_v63  ;;  %v2097_v63 = vld [vmem:[%s2422_s2 + $0xa8] sm:$0xff] }
 0x1e4   :  { %1506 = vmatprep.subr.mxu1 %v1749_v0  ;;  %v274_v5 = vpop.permute.xlu1 %273  ;;  %v265_v10 = vpop.permute.xlu0 %264 }
 0x1e5   :  { %1507 = vmatpush3.msra.mxu1 %v278_v3  ;;  %v275_v6 = vmul.f32 %v274_v5, %v1872_v22  ;;  %v266_v13 = vmul.f32 %v265_v10, %v1883_v32  ;;  %v2103_v3 = vld [vmem:[%s2422_s2 + $0xa0] sm:$0xff]  ;;  %v2115_v5 = vld [vmem:[%s2422_s2 + $0x90] sm:$0xff] }
 0x1e6   :  { %1508 = vmatprep.subr.mxu1 %v1749_v0  ;;  %v2139_v10 = vld [vmem:[%s2422_s2 + $0x70] sm:$0xff] }
 0x1e7   :  { %1509 = vmatpush3.msra.mxu1 %v1899_v42  ;;  %v2060_v42 = vld [vmem:[%s2422_s2 + $0xd8] sm:$0xff] }
 0x1e8   :  { %1510 = vmatprep.subr.mxu1 %v1749_v0  ;;  %v268_v7 = vpop.permute.xlu1 %267 }
 0x1e9   :  { %1511 = vmatpush3.msra.mxu1 %v275_v6  ;;  %v269_v11 = vmul.f32 %v268_v7, %v1878_v29  ;;  %v2121_v6 = vld [vmem:[%s2422_s2 + $0x88] sm:$0xff]  ;;  %v2127_v7 = vld [vmem:[%s2422_s2 + $0x80] sm:$0xff] }
 0x1ea   :  { %1512 = vmatprep.subr.mxu1 %v1749_v0 }
 0x1eb   :  { %1513 = vmatpush3.msra.mxu1 %v272_v8  ;;  %v2133_v8 = vld [vmem:[%s2422_s2 + $0x78] sm:$0xff] }
 0x1ec   :  { %1514 = vmatprep.subr.mxu1 %v1749_v0  ;;  %v262_v12 = vpop.permute.xlu1 %261 }
 0x1ed   :  { %1515 = vmatpush3.msra.mxu1 %v269_v11  ;;  %v263_v16 = vmul.f32 %v262_v12, %v1887_v35  ;;  %v2145_v11 = vld [vmem:[%s2422_s2 + $0x68] sm:$0xff]  ;;  %v2151_v12 = vld [vmem:[%s2422_s2 + $0x60] sm:$0xff] }
 0x1ee   :  { %1516 = vmatprep.subr.mxu1 %v1749_v0 }
 0x1ef   :  { %1517 = vmatpush3.msra.mxu1 %v266_v13  ;;  %v2157_v13 = vld [vmem:[%s2422_s2 + $0x58] sm:$0xff] }
 0x1f0   :  { %1518 = vmatprep.subr.mxu1 %v1749_v0 }
 0x1f1   :  { %1519 = vmatpush3.msra.mxu1 %v263_v16  ;;  %v2165_v16 = vld [vmem:[%s2422_s2 + $0x50] sm:$0xff] }
 0x1f2   :  { %1521 = vmatmul.mubr.msk.f32.vlgmr.msra.gmra.mxu1 %vm186_vm1, %v260_v17  ;;  %v2171_v17 = vld [vmem:[%s2422_s2 + $0x48] sm:$0xff] }
 0x1f3   :  { %1562 = vmatprep.mubr.msk.f32.mxu1 %vm434_vm2, %v2015_v23 }
 0x2b2   :  { %v2003_v19 = vpop.f32.mrf.mxu1 }
 0x2b3   :  { %v358_v20 = vmul.f32 %v2003_v19, %v2003_v19  ;;  %1555 = vmatprep.mubr.f32.mxu0 %v2003_v19 }
 0x2b4   :  { %v1522_v21 = vpop.f32.mrf.mxu1 }
 0x2b5   :  { %1556 = vmatmul.mubr.f32.vlgmr.msra.gmra.mxu0 %v358_v20  ;;  %v2177_v20 = vld [vmem:[%s2422_s2 + $0x40] sm:$0xff]  ;;  %v2183_v21 = vld [vmem:[%s2422_s2 + $0x38] sm:$0xff] }
 0x2b6   :  { %1571 = vmatpush3.msra.mxu0 %v2432_v1  ;;  %1576 = vmatprep.mubr.msk.f32.mxu0 %vm1755_vm0, %v1749_v0  ;;  %2442 = vst [vmem:[#allocation8_spill] sm:$0xff] %v2183_v21 }
 0x2b7   :  { %1572 = vmatprep.subr.mxu0 %v1749_v0 }
 0x375   :  { %v1557_v25 = vpop.f32.mrf.mxu0 }
 0x376   :  { %1558 = vmatprep.subr.mxu1 %v1557_v25 }
 0x377   :  { %v425_v26 = vpop.f32.mrf.mxu0  ;;  %1559 = vmatpush3.msra.mxu1 %v1557_v25  ;;  %v2189_v25 = vld [vmem:[%s2422_s2 + $0x30] sm:$0xff] }
 0x378   :  { %1560 = vmatprep.subr.mxu1 %v425_v26  ;;  %2443 = vst [vmem:[#allocation9_spill] sm:$0xff] %v2189_v25 }
 0x379   :  { %1561 = vmatpush3.msra.mxu1 %v425_v26  ;;  %v2195_v26 = vld [vmem:[%s2422_s2 + $0x28] sm:$0xff] }
 0x37a   :  { %1563 = vmatmul.mubr.msk.f32.vlgmr.msra.gmra.mxu1 %vm434_vm2, %v2022_v27  ;;  %1565 = vmatprep.subr.mxu1 %v2029_v28  ;;  %2444 = vst [vmem:[#allocation10_spill] sm:$0xff] %v2195_v26 }
 0x37b   :  { %1566 = vmatpush3.msra.mxu1 %v2029_v28 }
 0x37c   :  { %606 = vmatprep.subr.mxu1 %v2036_v30 }
 0x43a   :  { %v1564_v31 = vpop.f32.mrf.mxu1 }
 0x43c   :  { %v507_v33 = vpop.f32.mrf.mxu1 }
 0x43d   :  { %v516_v34 = vmul.f32 %v507_v33, %v507_v33  ;;  %1567 = vmatprep.mubr.msk.f32.mxu1 %vm520_vm3, %v507_v33  ;;  %v2207_v33 = vld [vmem:[%s2422_s2 + $0x18] sm:$0xff] }
 0x43e   :  { %2446 = vst [vmem:[#allocation12_spill] sm:$0xff] %v2207_v33 }
 0x43f   :  { %v517_v36 = vsub.f32 %v1564_v31, %v516_v34  ;;  %v2201_v31 = vld [vmem:[%s2422_s2 + $0x20] sm:$0xff]  ;;  %v2213_v34 = vld [vmem:[%s2422_s2 + $0x10] sm:$0xff] }
 0x440   :  { %2445 = vst [vmem:[#allocation11_spill] sm:$0xff] %v2201_v31  ;;  %2447 = vst [vmem:[#allocation13_spill] sm:$0xff] %v2213_v34 }
 0x441   :  { %v518_v37 = vadd.f32 1e-05, %v517_v36  ;;  %v2219_v36 = vld [vmem:[%s2422_s2 + $0x8] sm:$0xff] }
 0x442   :  { %2448 = vst [vmem:[#allocation14_spill] sm:$0xff] %v2219_v36 }
 0x443   :  { %1697 = vrsqrt.f32 %v518_v37  ;;  %v2225_v37 = vld [vmem:[%s2422_s2] sm:$0xff] }
 0x444   :  { %2449 = vst [vmem:[#allocation15_spill] sm:$0xff] %v2225_v37 }
 0x450   :  { %v1698_v39 = vpop.eup %1697 }
 0x451   :  { %1568 = vmatmul.mubr.msk.f32.vlgmr.msra.gmra.mxu1 %vm520_vm3, %v1698_v39 }
 0x452   :  { %607 = vmatpush1.msra.mxu1 %v2043_v38  ;;  %670 = vmatprep.mubr.f32.mxu1 %v1749_v0 }
 0x453   :  { %608 = vmatprep.subr.mxu1 %v2048_v40 }
 0x454   :  { %609 = vmatpush1.msra.mxu1 %v2054_v41 }
 0x455   :  { %610 = vmatprep.subr.mxu1 %v2060_v42 }
 0x456   :  { %611 = vmatpush1.msra.mxu1 %v2067_v43 }
 0x457   :  { %612 = vmatprep.subr.mxu1 %v2073_v59 }
 0x458   :  { %613 = vmatpush1.msra.mxu1 %v2079_v60 }
 0x459   :  { %614 = vmatprep.subr.mxu1 %v2085_v61 }
 0x45a   :  { %615 = vmatpush1.msra.mxu1 %v2091_v62 }
 0x45b   :  { %616 = vmatprep.subr.mxu1 %v2097_v63 }
 0x45c   :  { %617 = vmatpush1.msra.mxu1 %v2103_v3 }
 0x45d   :  { %618 = vmatprep.subr.mxu1 %v2109_v4 }
 0x45e   :  { %619 = vmatpush1.msra.mxu1 %v2115_v5 }
 0x45f   :  { %620 = vmatprep.subr.mxu1 %v2121_v6 }
 0x460   :  { %621 = vmatpush1.msra.mxu1 %v2127_v7 }
 0x461   :  { %622 = vmatprep.subr.mxu1 %v2133_v8 }
 0x462   :  { %623 = vmatpush1.msra.mxu1 %v2139_v10 }
 0x463   :  { %624 = vmatprep.subr.mxu1 %v2145_v11 }
 0x464   :  { %625 = vmatpush1.msra.mxu1 %v2151_v12 }
 0x465   :  { %626 = vmatprep.subr.mxu1 %v2157_v13 }
 0x466   :  { %627 = vmatpush1.msra.mxu1 %v2165_v16 }
 0x467   :  { %628 = vmatprep.subr.mxu1 %v2171_v17 }
 0x468   :  { %629 = vmatpush1.msra.mxu1 %v2177_v20 }
 0x469   :  { %630 = vmatprep.subr.mxu1 %v2183_v21  ;;  %v2450_v21 = vmov 1.0  }
 0x46a   :  { %631 = vmatpush1.msra.mxu1 %v2189_v25 }
 0x46b   :  { %632 = vmatprep.subr.mxu1 %v2195_v26 }
 0x46c   :  { %633 = vmatpush1.msra.mxu1 %v2201_v31 }
 0x46d   :  { %634 = vmatprep.subr.mxu1 %v2207_v33  ;;  %v122_v33 = vld [vmem:[%s2428_s8] sm:$0xff] }
 0x46e   :  { %635 = vmatpush1.msra.mxu1 %v2213_v34 }
 0x46f   :  { %636 = vmatprep.subr.mxu1 %v2219_v36  ;;  %v123_v36 = vld [vmem:[%s2428_s8 + $0x8] sm:$0xff] }
 0x470   :  { %637 = vmatpush1.msra.mxu1 %v2225_v37 }
 0x471   :  { %1602 = vmatprep.subr.mxu1 %v1749_v0 }
 0x511   :  { %v1569_v39 = vpop.f32.mrf.mxu1 }
 0x513   :  { %v593_v1 = vpop.f32.mrf.mxu1 }
 0x514   :  { %v602_v34 = vsub.f32 %v2003_v19, %v593_v1 }
 0x516   :  { %v603_v31 = vmul.f32 %v1569_v39, %v602_v34  ;;  %v677_v34 = vld [vmem:[%s2429_s9] sm:$0xff] }
 0x518   :  { %v604_v26 = vmul.f32 %v603_v31, %v122_v33 }
 0x51a   :  { %v605_v25 = vadd.f32 %v604_v26, %v123_v36 }
 0x51c   :  { %671 = vmatmul.mubr.f32.vlgmr.msra.gmra.mxu1 %v605_v25 }
 0x51d   :  { %1603 = vmatpush3.msra.mxu1 %v2450_v21  ;;  %1622 = vmatprep.mubr.msk.f32.mxu1 %vm1755_vm0, %v1749_v0 }
 0x51e   :  { %1604 = vmatprep.subr.mxu1 %v1749_v0 }
 0x5dc   :  { %v672_v1 = vpop.f32.mrf.mxu1 }
 0x5de   :  { %v674_v19 = vpop.f32.mrf.mxu1 }
 0x5df   :  { %1573 = vmatpush3.msra.mxu0 %v674_v19 }
 0x5e0   :  { %1574 = vmatprep.subr.mxu0 %v1749_v0 }
 0x5e1   :  { %1575 = vmatpush3.msra.mxu0 %v672_v1 }
 0x5e2   :  { %1577 = vmatmul.mubr.msk.f32.vlgmr.msra.gmra.mxu0 %vm678_vm4, %v677_v34  ;;  %1579 = vmatprep.subr.mxu0 %v1749_v0 }
 0x5e3   :  { %1580 = vmatpush3.msra.mxu0 %v2450_v21  ;;  %1599 = vmatprep.mubr.msk.f32.mxu0 %vm1755_vm0, %v1749_v0 }
 0x5e4   :  { %1581 = vmatprep.subr.mxu0 %v1749_v0 }
 0x6a2   :  { %v748_v26 = vpop.f32.mrf.mxu0 }
 0x6a3   :  { %v749_v31 = vadd.f32 %v748_v26, %v605_v25 }
 0x6a4   :  { %v1578_v33 = vpop.f32.mrf.mxu0 }
 0x6a5   :  { %v752_v36 = vmax.f32 %v749_v31, 0.0 }
 0x6a7   :  { %v2251_v39 = vadd.f32 %v752_v36, %v1837_v2  ;;  %v68_v2 = vld [vmem:[%s2421_s1 + $0x8] sm:$0xff] }
 0x6a9   :  { %777 = vrot.lane.b32.xlu1 %v2251_v39, %s1753_s12  ;;  %780 = vrot.lane.b32.xlu0 %v2251_v39, %s1751_s29 }
 0x6ad   :  { %771 = vrot.lane.b32.xlu1 %v2251_v39, %s1754_s13  ;;  %774 = vrot.lane.b32.xlu0 %v2251_v39, %s1752_s30 }
 0x6b1   :  { %765 = vrot.lane.b32.xlu1 %v2251_v39, %s1747_s21  ;;  %768 = vrot.lane.b32.xlu0 %v2251_v39, %s1756_s0 }
 0x6b5   :  { %759 = vrot.lane.b32.xlu1 %v2251_v39, %s1759_s15  ;;  %762 = vrot.lane.b32.xlu0 %v2251_v39, %s1758_s14 }
 0x6b9   :  { %785 = vperm.xlu0 %1696, %v68_v2  }
 0x71b   :  { %v778_v25 = vpop.permute.xlu1 %777  ;;  %v781_v1 = vpop.permute.xlu0 %780 }
 0x71c   :  { %v782_v19 = vmul.f32 %v1862_v9, %v781_v1  ;;  %v779_v34 = vmul.f32 %v778_v25, %v1865_v14 }
 0x71e   :  { %1582 = vmatpush3.msra.mxu0 %v782_v19 }
 0x71f   :  { %v772_v26 = vpop.permute.xlu1 %771  ;;  %1583 = vmatprep.subr.mxu0 %v1749_v0  ;;  %v775_v31 = vpop.permute.xlu0 %774 }
 0x720   :  { %v776_v33 = vmul.f32 %v775_v31, %v1867_v15  ;;  %1584 = vmatpush3.msra.mxu0 %v779_v34  ;;  %v773_v37 = vmul.f32 %v772_v26, %v1872_v22 }
 0x721   :  { %1585 = vmatprep.subr.mxu0 %v1749_v0 }
 0x722   :  { %1586 = vmatpush3.msra.mxu0 %v776_v33 }
 0x723   :  { %v766_v36 = vpop.permute.xlu1 %765  ;;  %1587 = vmatprep.subr.mxu0 %v1749_v0  ;;  %v769_v2 = vpop.permute.xlu0 %768 }
 0x724   :  { %1588 = vmatpush3.msra.mxu0 %v2251_v39  ;;  %v770_v25 = vmul.f32 %v769_v2, %v1874_v24  ;;  %v767_v19 = vmul.f32 %v766_v36, %v1878_v29 }
 0x725   :  { %1589 = vmatprep.subr.mxu0 %v1749_v0 }
 0x726   :  { %1590 = vmatpush3.msra.mxu0 %v773_v37  ;;  %v1365_v37 = vld [vmem:[%s2426_s6 + $0x8] sm:$0xff] }
 0x727   :  { %1591 = vmatprep.subr.mxu0 %v1749_v0  ;;  %v763_v1 = vpop.permute.xlu0 %762  ;;  %v760_v34 = vpop.permute.xlu1 %759 }
 0x728   :  { %1592 = vmatpush3.msra.mxu0 %v770_v25  ;;  %v764_v31 = vmul.f32 %v763_v1, %v1883_v32  ;;  %v761_v26 = vmul.f32 %v760_v34, %v1887_v35 }
 0x729   :  { %1593 = vmatprep.subr.mxu0 %v1749_v0 }
 0x72a   :  { %1594 = vmatpush3.msra.mxu0 %v767_v19 }
 0x72b   :  { %1595 = vmatprep.subr.mxu0 %v1749_v0 }
 0x72c   :  { %1596 = vmatpush3.msra.mxu0 %v764_v31 }
 0x72d   :  { %1597 = vmatprep.subr.mxu0 %v1749_v0 }
 0x72e   :  { %1598 = vmatpush3.msra.mxu0 %v761_v26 }
 0x72f   :  { %1600 = vmatmul.mubr.msk.f32.vlgmr.msra.gmra.mxu0 %vm186_vm1, %v1365_v37  ;;  %1625 = vmatprep.subr.mxu0 %v1913_v44 }
 0x730   :  { %1626 = vmatpush3.msra.mxu0 %v1913_v44 }
 0x731   :  { %1627 = vmatprep.subr.mxu0 %v1915_v45 }
 0x732   :  { %1628 = vmatpush3.msra.mxu0 %v1915_v45 }
 0x733   :  { %1629 = vmatprep.subr.mxu0 %v1919_v46 }
 0x734   :  { %1630 = vmatpush3.msra.mxu0 %v1919_v46  ;;  %v786_v44 = vpop.permute.xlu0 %785 }
 0x735   :  { %1631 = vmatprep.subr.mxu0 %v1925_v47 }
 0x736   :  { %1632 = vmatpush3.msra.mxu0 %v1925_v47 }
 0x737   :  { %1633 = vmatprep.subr.mxu0 %v1929_v48 }
 0x738   :  { %1634 = vmatpush3.msra.mxu0 %v1929_v48 }
 0x739   :  { %1635 = vmatprep.subr.mxu0 %v1935_v49 }
 0x73a   :  { %1636 = vmatpush3.msra.mxu0 %v1935_v49 }
 0x73b   :  { %1637 = vmatprep.subr.mxu0 %v1939_v50 }
 0x73c   :  { %1638 = vmatpush3.msra.mxu0 %v1939_v50 }
 0x73d   :  { %1639 = vmatprep.subr.mxu0 %v1943_v51 }
 0x73e   :  { %1640 = vmatpush3.msra.mxu0 %v1943_v51 }
 0x73f   :  { %1641 = vmatprep.subr.mxu0 %v1947_v52 }
 0x740   :  { %1642 = vmatpush3.msra.mxu0 %v1947_v52 }
 0x741   :  { %1643 = vmatprep.subr.mxu0 %v1951_v53 }
 0x742   :  { %1644 = vmatpush3.msra.mxu0 %v1951_v53 }
 0x743   :  { %1645 = vmatprep.subr.mxu0 %v1955_v54 }
 0x744   :  { %1646 = vmatpush3.msra.mxu0 %v1955_v54 }
 0x745   :  { %1647 = vmatprep.subr.mxu0 %v1959_v55 }
 0x746   :  { %1648 = vmatpush3.msra.mxu0 %v1959_v55 }
 0x747   :  { %1649 = vmatprep.subr.mxu0 %v1963_v56 }
 0x748   :  { %1650 = vmatpush3.msra.mxu0 %v1963_v56 }
 0x749   :  { %1651 = vmatprep.subr.mxu0 %v1967_v57 }
 0x74a   :  { %1652 = vmatpush3.msra.mxu0 %v1967_v57 }
 0x74b   :  { %1653 = vmatprep.subr.mxu0 %v1971_v58 }
 0x74c   :  { %1654 = vmatpush3.msra.mxu0 %v1971_v58 }
 0x74d   :  { %1655 = vmatprep.subr.mxu0 %v1998_v18 }
 0x74e   :  { %1656 = vmatpush3.msra.mxu0 %v1998_v18 }
 0x74f   :  { %1672 = vmatprep.subr.mxu0 %v1749_v0 }
 0x7ef   :  { %v857_v45 = vpop.f32.mrf.mxu0 }
 0x7f0   :  { %v858_v46 = vadd.f32 %v857_v45, %v786_v44 }
 0x7f1   :  { %v1601_v47 = vpop.f32.mrf.mxu0 }
 0x7f2   :  { %881 = vrot.lane.b32.xlu0 %v858_v46, %s1753_s12  ;;  %884 = vrot.lane.b32.xlu1 %v858_v46, %s1751_s29 }
 0x7f6   :  { %875 = vrot.lane.b32.xlu0 %v858_v46, %s1754_s13  ;;  %878 = vrot.lane.b32.xlu1 %v858_v46, %s1752_s30 }
 0x7fa   :  { %869 = vrot.lane.b32.xlu0 %v858_v46, %s1747_s21  ;;  %872 = vrot.lane.b32.xlu1 %v858_v46, %s1756_s0 }
 0x7fe   :  { %863 = vrot.lane.b32.xlu0 %v858_v46, %s1759_s15  ;;  %866 = vrot.lane.b32.xlu1 %v858_v46, %s1758_s14 }
 0x864   :  { %v882_v48 = vpop.permute.xlu0 %881  ;;  %v885_v49 = vpop.permute.xlu1 %884 }
 0x865   :  { %v886_v50 = vmul.f32 %v1862_v9, %v885_v49  ;;  %v883_v51 = vmul.f32 %v882_v48, %v1865_v14 }
 0x867   :  { %1605 = vmatpush3.msra.mxu1 %v886_v50 }
 0x868   :  { %v876_v52 = vpop.permute.xlu0 %875  ;;  %1606 = vmatprep.subr.mxu1 %v1749_v0  ;;  %v879_v53 = vpop.permute.xlu1 %878 }
 0x869   :  { %v880_v54 = vmul.f32 %v879_v53, %v1867_v15  ;;  %1607 = vmatpush3.msra.mxu1 %v883_v51  ;;  %v877_v57 = vmul.f32 %v876_v52, %v1872_v22 }
 0x86a   :  { %1608 = vmatprep.subr.mxu1 %v1749_v0 }
 0x86b   :  { %1609 = vmatpush3.msra.mxu1 %v880_v54 }
 0x86c   :  { %v870_v55 = vpop.permute.xlu0 %869  ;;  %1610 = vmatprep.subr.mxu1 %v1749_v0  ;;  %v873_v56 = vpop.permute.xlu1 %872 }
 0x86d   :  { %1611 = vmatpush3.msra.mxu1 %v858_v46  ;;  %v874_v9 = vmul.f32 %v873_v56, %v1874_v24  ;;  %v871_v15 = vmul.f32 %v870_v55, %v1878_v29  ;;  %v1367_v24 = vld [vmem:[%s2427_s7 + $0x8] sm:$0xff] }
 0x86e   :  { %1612 = vmatprep.subr.mxu1 %v1749_v0 }
 0x86f   :  { %1613 = vmatpush3.msra.mxu1 %v877_v57 }
 0x870   :  { %1614 = vmatprep.subr.mxu1 %v1749_v0  ;;  %v867_v14 = vpop.permute.xlu1 %866  ;;  %v864_v58 = vpop.permute.xlu0 %863 }
 0x871   :  { %1615 = vmatpush3.msra.mxu1 %v874_v9  ;;  %v868_v18 = vmul.f32 %v867_v14, %v1883_v32  ;;  %v865_v22 = vmul.f32 %v864_v58, %v1887_v35 }
 0x872   :  { %1616 = vmatprep.subr.mxu1 %v1749_v0 }
 0x873   :  { %1617 = vmatpush3.msra.mxu1 %v871_v15 }
 0x874   :  { %1618 = vmatprep.subr.mxu1 %v1749_v0 }
 0x875   :  { %1619 = vmatpush3.msra.mxu1 %v868_v18 }
 0x876   :  { %1620 = vmatprep.subr.mxu1 %v1749_v0 }
 0x877   :  { %1621 = vmatpush3.msra.mxu1 %v865_v22 }
 0x878   :  { %1623 = vmatmul.mubr.msk.f32.vlgmr.msra.gmra.mxu1 %vm186_vm1, %v1367_v24 }
 0x879   :  { %1664 = vmatprep.mubr.msk.f32.mxu1 %vm434_vm2, %v2015_v23 }
 0x938   :  { %v2356_v29 = vpop.f32.mrf.mxu1 }
 0x939   :  { %v960_v32 = vmul.f32 %v2356_v29, %v2356_v29  ;;  %1657 = vmatprep.mubr.f32.mxu0 %v2356_v29 }
 0x93a   :  { %v1624_v35 = vpop.f32.mrf.mxu1 }
 0x93b   :  { %1658 = vmatmul.mubr.f32.vlgmr.msra.gmra.mxu0 %v960_v32 }
 0x93c   :  { %1673 = vmatpush3.msra.mxu0 %v2450_v21  ;;  %1678 = vmatprep.mubr.msk.f32.mxu0 %vm1755_vm0, %v1749_v0 }
 0x93d   :  { %1674 = vmatprep.subr.mxu0 %v1749_v0 }
 0x9fb   :  { %v1659_v33 = vpop.f32.mrf.mxu0 }
 0x9fc   :  { %1660 = vmatprep.subr.mxu1 %v1659_v33 }
 0x9fd   :  { %v1027_v36 = vpop.f32.mrf.mxu0  ;;  %1661 = vmatpush3.msra.mxu1 %v1659_v33 }
 0x9fe   :  { %1662 = vmatprep.subr.mxu1 %v1027_v36 }
 0x9ff   :  { %1663 = vmatpush3.msra.mxu1 %v1027_v36 }
 0xa00   :  { %1665 = vmatmul.mubr.msk.f32.vlgmr.msra.gmra.mxu1 %vm434_vm2, %v2022_v27  ;;  %1667 = vmatprep.subr.mxu1 %v2029_v28  ;;  %v2451_v27 = vld [vmem:[#allocation8_spill] sm:$0xff] }
 0xa01   :  { %1668 = vmatpush3.msra.mxu1 %v2029_v28  ;;  %v2452_v28 = vld [vmem:[#allocation9_spill] sm:$0xff] }
 0xa02   :  { %1200 = vmatprep.subr.mxu1 %v2036_v30  ;;  %v2453_v30 = vld [vmem:[#allocation10_spill] sm:$0xff] }
 0xac0   :  { %v1666_v23 = vpop.f32.mrf.mxu1 }
 0xac2   :  { %v1102_v21 = vpop.f32.mrf.mxu1 }
 0xac3   :  { %v1111_v2 = vmul.f32 %v1102_v21, %v1102_v21  ;;  %1669 = vmatprep.mubr.msk.f32.mxu1 %vm520_vm3, %v1102_v21 }
 0xac5   :  { %v1112_v25 = vsub.f32 %v1666_v23, %v1111_v2 }
 0xac7   :  { %v1113_v1 = vadd.f32 1e-05, %v1112_v25 }
 0xac9   :  { %1699 = vrsqrt.f32 %v1113_v1 }
 0xad6   :  { %v1700_v19 = vpop.eup %1699 }
 0xad7   :  { %1670 = vmatmul.mubr.msk.f32.vlgmr.msra.gmra.mxu1 %vm520_vm3, %v1700_v19 }
 0xad8   :  { %1201 = vmatpush1.msra.mxu1 %v2043_v38  ;;  %1264 = vmatprep.mubr.f32.mxu1 %v1749_v0  ;;  %v2454_v38 = vld [vmem:[#allocation11_spill] sm:$0xff] }
 0xad9   :  { %1202 = vmatprep.subr.mxu1 %v2048_v40  ;;  %v2455_v40 = vld [vmem:[#allocation12_spill] sm:$0xff] }
 0xada   :  { %1203 = vmatpush1.msra.mxu1 %v2054_v41  ;;  %v2456_v41 = vld [vmem:[#allocation13_spill] sm:$0xff] }
 0xadb   :  { %1204 = vmatprep.subr.mxu1 %v2060_v42  ;;  %v2457_v42 = vld [vmem:[#allocation14_spill] sm:$0xff] }
 0xadc   :  { %1205 = vmatpush1.msra.mxu1 %v2067_v43  ;;  %v2458_v43 = vld [vmem:[#allocation15_spill] sm:$0xff] }
 0xadd   :  { %1206 = vmatprep.subr.mxu1 %v2073_v59 }
 0xade   :  { %1207 = vmatpush1.msra.mxu1 %v2079_v60 }
 0xadf   :  { %1208 = vmatprep.subr.mxu1 %v2085_v61 }
 0xae0   :  { %1209 = vmatpush1.msra.mxu1 %v2091_v62  ;;  %v1363_v62 = vld [vmem:[%s2428_s8 + $0x10] sm:$0xff] }
 0xae1   :  { %1210 = vmatprep.subr.mxu1 %v2097_v63 }
 0xae2   :  { %1211 = vmatpush1.msra.mxu1 %v2103_v3  ;;  %v1364_v3 = vld [vmem:[%s2428_s8 + $0x18] sm:$0xff] }
 0xae3   :  { %1212 = vmatprep.subr.mxu1 %v2109_v4 }
 0xae4   :  { %1213 = vmatpush1.msra.mxu1 %v2115_v5 }
 0xae5   :  { %1214 = vmatprep.subr.mxu1 %v2121_v6 }
 0xae6   :  { %1215 = vmatpush1.msra.mxu1 %v2127_v7 }
 0xae7   :  { %1216 = vmatprep.subr.mxu1 %v2133_v8  ;;  %v1373_v8 = vld [vmem:[%s2429_s9 + $0x8] sm:$0xff] }
 0xae8   :  { %1217 = vmatpush1.msra.mxu1 %v2139_v10 }
 0xae9   :  { %1218 = vmatprep.subr.mxu1 %v2145_v11 }
 0xaea   :  { %1219 = vmatpush1.msra.mxu1 %v2151_v12 }
 0xaeb   :  { %1220 = vmatprep.subr.mxu1 %v2157_v13 }
 0xaec   :  { %1221 = vmatpush1.msra.mxu1 %v2165_v16 }
 0xaed   :  { %1222 = vmatprep.subr.mxu1 %v2171_v17 }
 0xaee   :  { %1223 = vmatpush1.msra.mxu1 %v2177_v20 }
 0xaef   :  { %1224 = vmatprep.subr.mxu1 %v2451_v27 }
 0xaf0   :  { %1225 = vmatpush1.msra.mxu1 %v2452_v28 }
 0xaf1   :  { %1226 = vmatprep.subr.mxu1 %v2453_v30 }
 0xaf2   :  { %1227 = vmatpush1.msra.mxu1 %v2454_v38 }
 0xaf3   :  { %1228 = vmatprep.subr.mxu1 %v2455_v40 }
 0xaf4   :  { %1229 = vmatpush1.msra.mxu1 %v2456_v41 }
 0xaf5   :  { %1230 = vmatprep.subr.mxu1 %v2457_v42 }
 0xaf6   :  { %1231 = vmatpush1.msra.mxu1 %v2458_v43 }
 0xb97   :  { %v1671_v59 = vpop.f32.mrf.mxu1 }
 0xb99   :  { %v1187_v60 = vpop.f32.mrf.mxu1 }
 0xb9a   :  { %v1196_v61 = vsub.f32 %v2356_v29, %v1187_v60 }
 0xb9c   :  { %v1197_v63 = vmul.f32 %v1671_v59, %v1196_v61 }
 0xb9e   :  { %v1198_v4 = vmul.f32 %v1363_v62, %v1197_v63 }
 0xba0   :  { %v1199_v5 = vadd.f32 %v1364_v3, %v1198_v4 }
 0xba2   :  { %1265 = vmatmul.mubr.f32.vlgmr.msra.gmra.mxu1 %v1199_v5 }
 0xc62   :  { %v1266_v6 = vpop.f32.mrf.mxu1 }
 0xc64   :  { %v1268_v7 = vpop.f32.mrf.mxu1 }
 0xc65   :  { %1675 = vmatpush3.msra.mxu0 %v1268_v7 }
 0xc66   :  { %1676 = vmatprep.subr.mxu0 %v1749_v0 }
 0xc67   :  { %1677 = vmatpush3.msra.mxu0 %v1266_v6 }
 0xc68   :  { %1679 = vmatmul.mubr.msk.f32.vlgmr.msra.gmra.mxu0 %vm678_vm4, %v1373_v8 }
 0xd28   :  { %v1342_v10 = vpop.f32.mrf.mxu0 }
 0xd29   :  { %v1343_v11 = vadd.f32 %v1342_v10, %v1199_v5 }
 0xd2a   :  { %v1680_v12 = vpop.f32.mrf.mxu0 }
 0xd2b   :  { %v1346_v13 = vmax.f32 %v1343_v11, 0.0 }
 0xd2d   :  { %v1347_v16 = vadd.f32 %v1346_v13, %v2251_v39 }
 0xd2f   :  { %1348 = vst [vmem:[%s2431_s11] sm:$0xff] %v1347_v16 }
 0xd30   :  { %1353 = vsyncpa [#allocation3], 1 }
 0xd31   :  { %1354 = vsyncpa [#allocation5], 1 }

</bundles_post_ra>
